<compile_context>
chip_gen: v7x
topology: tpu7x:2x2x1
jax: 0.10.0
libtpu: 0.0.40
codegen_flags: <defaults>
</compile_context>

<pallas_src>
import functools

import jax
import jax.numpy as jnp
import numpy as np
from jax.experimental import pallas as pl
from jax.experimental.pallas import tpu as pltpu

PAD_IDX = 0


# --------------------------------------------------------------------- embedding gather

def _embed_kernel(tok_ref, pos_ref, emb_blk_ref, pos_blk_ref, out_ref):
    # The gather itself is done by the BlockSpec index_maps (scalar-prefetched row
    # indices drive the DMA); the body just adds the two rows.
    out_ref[...] = emb_blk_ref[...] + pos_blk_ref[...]


def embed_lookup(tokens, pos, emb_table, pos_table):
    """x = embeddings(tokens) + positions(pos).  Tables are stored as (V, 1, E)."""
    B, L = tokens.shape
    E = emb_table.shape[-1]
    tok_flat = tokens.reshape(-1).astype(jnp.int32)
    pos_flat = pos.reshape(-1).astype(jnp.int32)
    out = pl.pallas_call(
        _embed_kernel,
        out_shape=jax.ShapeDtypeStruct((B * L, 1, E), jnp.float32),
        grid_spec=pltpu.PrefetchScalarGridSpec(
            num_scalar_prefetch=2,
            grid=(B * L,),
            in_specs=[
                pl.BlockSpec((1, 1, E), lambda i, tok, pp: (tok[i], 0, 0)),
                pl.BlockSpec((1, 1, E), lambda i, tok, pp: (pp[i], 0, 0)),
            ],
            out_specs=pl.BlockSpec((1, 1, E), lambda i, tok, pp: (i, 0, 0)),
        ),
        compiler_params=pltpu.CompilerParams(dimension_semantics=("arbitrary",)),
    )(tok_flat, pos_flat, emb_table, pos_table)
    return out.reshape(B, L, E)


# ---------------------------------------------------------- fused multi-layer FFT stack

def _padded_len(L, pad):
    return ((pad + 7) // 8) * 8 + L + pad


def _make_stack_kernel(L, E, H, num_heads, k1, p1, k2, p2):
    dh = E // num_heads
    scale = 1.0 / float(dh) ** 0.5
    f32, bf16 = jnp.float32, jnp.bfloat16
    need_xp1, need_xp2 = p1 > 0, p2 > 0

    def layer_norm(h, g, b):
        mu = jnp.mean(h, axis=-1, keepdims=True)
        var = jnp.mean(jnp.square(h - mu), axis=-1, keepdims=True)
        return (h - mu) * jax.lax.rsqrt(var + 1e-5) * g + b

    def conv1d(inp, xp_ref, w_ref, b, ks, pad):
        # w_ref: (1, ks, Cin, Cout) block; b: (1, Cout)
        if pad == 0:
            # 2*pad == ks-1  =>  ks == 1: plain matmul, no scratch / copies needed.
            return jnp.dot(inp.astype(bf16), w_ref[0, 0],
                           preferred_element_type=f32) + b
        cin = inp.shape[-1]
        cout = w_ref.shape[-1]
        off = ((pad + 7) // 8) * 8                     # aligned write offset (>= pad)
        base = off - pad
        # Zero ONLY the pad rows (head + tail); interior is overwritten just below.
        xp_ref[0:off, :] = jnp.zeros((off, cin), f32)
        xp_ref[off + L:off + L + pad, :] = jnp.zeros((pad, cin), f32)
        xp_ref[off:off + L, :] = inp
        acc = jnp.zeros((L, cout), f32)
        for kk in range(ks):                           # static unroll; MXU matmul per tap
            acc = acc + jnp.dot(xp_ref[base + kk:base + kk + L, :].astype(bf16),
                                w_ref[0, kk], preferred_element_type=f32)
        return acc + b

    def kernel(x_ref, bias_ref,
               wqkv_ref, bqkv_ref, wo_ref, bo_ref, g1_ref, be1_ref,
               w1_ref, b1_ref, w2_ref, b2_ref, g2_ref, be2_ref,
               out_ref, xcur_ref, *pad_refs):
        i = 0
        xp1_ref = pad_refs[i] if need_xp1 else None
        i += 1 if need_xp1 else 0
        xp2_ref = pad_refs[i] if need_xp2 else None

        l = pl.program_id(1)

        @pl.when(l == 0)
        def _():                                       # load the embeddings once per batch row
            xcur_ref[...] = x_ref[0]

        x = xcur_ref[...]                              # (L, E) running activation, f32
        key_bias = jnp.broadcast_to(bias_ref[0], (L, L))   # hoisted out of head loop

        wo = wo_ref[0]                                 # (E, E) bf16

        # ---- multi-head self-attention (dropout = identity in eval) ----------------
        qkv = jnp.dot(x.astype(bf16), wqkv_ref[0],
                      preferred_element_type=f32) + bqkv_ref[0]              # (L, 3E)
        mha = jnp.zeros((L, E), f32)
        for h in range(num_heads):                     # static unroll over heads
            lo = h * dh
            qh = (qkv[:, lo:lo + dh] * scale).astype(bf16)
            kh = qkv[:, E + lo:E + lo + dh].astype(bf16)
            vh = qkv[:, 2 * E + lo:2 * E + lo + dh].astype(bf16)
            s = jnp.dot(qh, kh.T, preferred_element_type=f32) + key_bias     # (L, L)
            s = s - jnp.max(s, axis=-1, keepdims=True)
            p = jnp.exp(s)
            inv = pl.reciprocal(jnp.sum(p, axis=-1, keepdims=True), approx=True)
            oh = jnp.dot(p.astype(bf16), vh, preferred_element_type=f32) * inv
            # out_proj applied per head-slice of its (transposed) weight rows, summed
            mha = mha + jnp.dot(oh.astype(bf16), wo[lo:lo + dh, :],
                                preferred_element_type=f32)
        mha = mha + bo_ref[0]
        x1 = x + layer_norm(mha, g1_ref[0], be1_ref[0])    # x + norm(mha(x, x, x))

        # ---- conv feed-forward: conv1d -> ReLU -> conv1d -> LayerNorm, residual ----
        hid = jnp.maximum(conv1d(x1, xp1_ref, w1_ref, b1_ref[0], k1, p1), 0.0)
        c = conv1d(hid, xp2_ref, w2_ref, b2_ref[0], k2, p2)
        xnew = x1 + layer_norm(c, g2_ref[0], be2_ref[0])

        xcur_ref[...] = xnew                           # carried to the next layer in VMEM

        @pl.when(l == pl.num_programs(1) - 1)
        def _():
            out_ref[0] = xnew.astype(out_ref.dtype)

    return kernel


def encoder_stack(x, bias, params, *, num_heads, k1, p1, k2, p2):
    B, L, E = x.shape
    n_layers = params["wqkv"].shape[0]
    H = params["b1"].shape[-1]
    assert 2 * p1 == k1 - 1 and 2 * p2 == k2 - 1, "convs must preserve length for residual"
    assert E % num_heads == 0

    kernel = _make_stack_kernel(L, E, H, num_heads, k1, p1, k2, p2)

    def lspec(shape):                                  # per-layer stacked weight spec
        nd = len(shape)
        return pl.BlockSpec((1,) + shape, lambda b, l, _nd=nd: (l,) + (0,) * _nd)

    scratch = [pltpu.VMEM((L, E), jnp.float32)]        # running activation
    if p1 > 0:
        scratch.append(pltpu.VMEM((_padded_len(L, p1), E), jnp.float32))
    if p2 > 0:
        scratch.append(pltpu.VMEM((_padded_len(L, p2), H), jnp.float32))

    return pl.pallas_call(
        kernel,
        out_shape=jax.ShapeDtypeStruct((B, L, E), jnp.float32),
        grid=(B, n_layers),
        in_specs=[
            pl.BlockSpec((1, L, E), lambda b, l: (b, 0, 0)),   # x (embeddings)
            pl.BlockSpec((1, 1, L), lambda b, l: (b, 0, 0)),   # key-pad additive bias
            lspec((E, 3 * E)), lspec((1, 3 * E)),              # in_proj  W^T, b
            lspec((E, E)), lspec((1, E)),                      # out_proj W^T, b
            lspec((1, E)), lspec((1, E)),                      # post-MHA LayerNorm g, b
            lspec((k1, E, H)), lspec((1, H)),                  # conv1 (K, Cin, Cout), b
            lspec((k2, H, E)), lspec((1, E)),                  # conv2 (K, Cin, Cout), b
            lspec((1, E)), lspec((1, E)),                      # conv LayerNorm g, b
        ],
        out_specs=pl.BlockSpec((1, L, E), lambda b, l: (b, 0, 0)),
        scratch_shapes=scratch,
        compiler_params=pltpu.CompilerParams(
            dimension_semantics=("parallel", "arbitrary")),
    )(x, bias,
      params["wqkv"], params["bqkv"], params["wo"], params["bo"],
      params["g1"], params["be1"], params["w1"], params["b1"],
      params["w2"], params["b2"], params["g2"], params["be2"])


# ------------------------------------------------------------------ full Encoder forward

@functools.partial(jax.jit, static_argnames=("num_heads", "k1", "p1", "k2", "p2"))
def encoder_forward(tokens, pos, params, *, num_heads, k1, p1, k2, p2):
    x = embed_lookup(tokens, pos, params["emb_table"], params["pos_table"])
    # attn_mask: key j is masked (all heads, all queries) iff tokens[b, j] == PAD.
    bias = jnp.where(tokens == PAD_IDX, -1e30, 0.0).astype(jnp.float32)[:, None, :]
    return encoder_stack(x, bias, params,
                         num_heads=num_heads, k1=k1, p1=p1, k2=k2, p2=p2)


# ------------------------------------------------------------------------ pure-JAX ref

def encoder_reference(tokens, pos, params, *, num_heads, k1, p1, k2, p2):
    emb = params["emb_table"][:, 0, :]
    pot = params["pos_table"][:, 0, :]
    x = emb[tokens] + pot[pos]
    B, L, E = x.shape
    dh = E // num_heads
    scale = 1.0 / float(dh) ** 0.5
    bias = jnp.where(tokens == PAD_IDX, -1e30, 0.0).astype(jnp.float32)[:, None, :]
    n_layers = params["wqkv"].shape[0]

    def ln(h, g, b):
        mu = h.mean(-1, keepdims=True)
        var = ((h - mu) ** 2).mean(-1, keepdims=True)
        return (h - mu) / jnp.sqrt(var + 1e-5) * g + b

    def conv(inp, w, b, pad):
        ks = w.shape[0]
        xp = jnp.pad(inp, ((0, 0), (pad, pad), (0, 0)))
        acc = sum(jnp.einsum("blc,ch->blh", xp[:, kk:kk + L, :], w[kk].astype(jnp.float32))
                  for kk in range(ks))
        return acc + b

    for i in range(n_layers):
        wqkv = params["wqkv"][i].astype(jnp.float32)
        wo = params["wo"][i].astype(jnp.float32)
        qkv = x @ wqkv + params["bqkv"][i]
        mh = jnp.zeros_like(x)
        for h in range(num_heads):
            lo = h * dh
            q = qkv[:, :, lo:lo + dh] * scale
            k = qkv[:, :, E + lo:E + lo + dh]
            v = qkv[:, :, 2 * E + lo:2 * E + lo + dh]
            s = jnp.einsum("bqd,bkd->bqk", q, k) + bias
            p = jax.nn.softmax(s, axis=-1)
            o = jnp.einsum("bqk,bkd->bqd", p, v)
            mh = mh + jnp.einsum("bqd,de->bqe", o, wo[lo:lo + dh, :])
        mh = mh + params["bo"][i]
        x = x + ln(mh, params["g1"][i], params["be1"][i])
        hid = jax.nn.relu(conv(x, params["w1"][i], params["b1"][i], p1))
        c = conv(hid, params["w2"][i], params["b2"][i], p2)
        x = x + ln(c, params["g2"][i], params["be2"][i])
    return x


# -------------------------------------------------------------------------- param init

def init_encoder_params(key, *, vocab_size, max_seq_len, emb_dim, hidden_dim,
                        n_layers, k1, k2):
    keys = jax.random.split(key, 16)
    s = 0.1
    nl = n_layers
    emb = jax.random.normal(keys[0], (vocab_size, 1, emb_dim), jnp.float32) * s
    emb = emb.at[PAD_IDX].set(0.0)                       # nn.Embedding padding_idx=0
    pot = jax.random.normal(keys[1], (max_seq_len + 1, 1, emb_dim), jnp.float32) * s
    pot = pot.at[PAD_IDX].set(0.0)
    return dict(
        emb_table=emb, pos_table=pot,
        # per-layer weights stacked along a leading layer axis (selected by index_map)
        wqkv=(jax.random.normal(keys[2], (nl, emb_dim, 3 * emb_dim)) * s).astype(jnp.bfloat16),
        bqkv=(jax.random.normal(keys[3], (nl, 1, 3 * emb_dim)) * s).astype(jnp.float32),
        wo=(jax.random.normal(keys[4], (nl, emb_dim, emb_dim)) * s).astype(jnp.bfloat16),
        bo=(jax.random.normal(keys[5], (nl, 1, emb_dim)) * s).astype(jnp.float32),
        g1=jnp.ones((nl, 1, emb_dim), jnp.float32),
        be1=(jax.random.normal(keys[6], (nl, 1, emb_dim)) * s).astype(jnp.float32),
        w1=(jax.random.normal(keys[7], (nl, k1, emb_dim, hidden_dim)) * s).astype(jnp.bfloat16),
        b1=(jax.random.normal(keys[8], (nl, 1, hidden_dim)) * s).astype(jnp.float32),
        w2=(jax.random.normal(keys[9], (nl, k2, hidden_dim, emb_dim)) * s).astype(jnp.bfloat16),
        b2=(jax.random.normal(keys[10], (nl, 1, emb_dim)) * s).astype(jnp.float32),
        g2=jnp.ones((nl, 1, emb_dim), jnp.float32),
        be2=(jax.random.normal(keys[11], (nl, 1, emb_dim)) * s).astype(jnp.float32),
    )


# -------------------------------------------------------------------------------- main

if __name__ == "__main__":
    B, L = 2, 16
    E, H = 32, 64
    V, MAX_SEQ_LEN = 40, 32
    NUM_HEADS, N_LAYERS = 2, 2
    K1, P1, K2, P2 = 9, 4, 1, 0          # fft conv kernel sizes / paddings

    key = jax.random.PRNGKey(0)
    k_tok, k_par = jax.random.split(key, 2)

    lengths = jnp.array([L, L - 5])                         # second sequence is padded
    idx = jnp.arange(L)[None, :]
    valid = idx < lengths[:, None]
    tokens = jnp.where(valid, jax.random.randint(k_tok, (B, L), 1, V), PAD_IDX).astype(jnp.int32)
    pos = jnp.where(valid, idx + 1, 0).astype(jnp.int32)

    params = init_encoder_params(k_par, vocab_size=V, max_seq_len=MAX_SEQ_LEN,
                                 emb_dim=E, hidden_dim=H, n_layers=N_LAYERS,
                                 k1=K1, k2=K2)

    out = encoder_forward(tokens, pos, params,
                          num_heads=NUM_HEADS, k1=K1, p1=P1, k2=K2, p2=P2)
    out = jax.block_until_ready(out)

    assert out.shape == (B, L, E)
    ref = encoder_reference(tokens, pos, params,
                            num_heads=NUM_HEADS, k1=K1, p1=P1, k2=K2, p2=P2)
    err = float(jnp.max(jnp.abs(out - np.asarray(ref))))
    assert err < 0.1, f"max abs error vs reference too large: {err}"
    print("KERNEL_OK")
</pallas_src>

<mosaic_0001>
module attributes {stable_mosaic.version = 11 : i64} {
  func.func @_embed_kernel(%arg0: i32, %arg1: memref<32xi32, #tpu.memory_space<smem>>, %arg2: memref<32xi32, #tpu.memory_space<smem>>, %arg3: memref<1x1x32xf32, #tpu.memory_space<vmem>>, %arg4: memref<1x1x32xf32, #tpu.memory_space<vmem>>, %arg5: memref<1x1x32xf32, #tpu.memory_space<vmem>>) attributes {dimension_semantics = [#tpu.dimension_semantics<arbitrary>], iteration_bounds = array<i64: 32>, scalar_prefetch = 2 : i64, scratch_operands = 0 : i64, tpu.core_type = #tpu.core_type<tc>, window_params = [{transform_indices = @transform_0, window_bounds = array<i64: 1, 1, 32>}, {transform_indices = @transform_1, window_bounds = array<i64: 1, 1, 32>}, {transform_indices = @transform_2, window_bounds = array<i64: 1, 1, 32>}]} {
    %c0 = arith.constant 0 : index
    %c0_0 = arith.constant 0 : index
    %c0_1 = arith.constant 0 : index
    %0 = vector.load %arg3[%c0, %c0_0, %c0_1] : memref<1x1x32xf32, #tpu.memory_space<vmem>>, vector<1x1x32xf32>
    %c0_2 = arith.constant 0 : index
    %c0_3 = arith.constant 0 : index
    %c0_4 = arith.constant 0 : index
    %1 = vector.load %arg4[%c0_2, %c0_3, %c0_4] : memref<1x1x32xf32, #tpu.memory_space<vmem>>, vector<1x1x32xf32>
    %2 = arith.addf %0, %1 : vector<1x1x32xf32>
    %c0_5 = arith.constant 0 : index
    %c0_6 = arith.constant 0 : index
    %c0_7 = arith.constant 0 : index
    %3 = vector.load %arg5[%c0_5, %c0_6, %c0_7] : memref<1x1x32xf32, #tpu.memory_space<vmem>>, vector<1x1x32xf32>
    tpu.vector_store %arg5[%c0_5, %c0_6, %c0_7], %2 {strides = array<i32>} : memref<1x1x32xf32, #tpu.memory_space<vmem>>, vector<1x1x32xf32>,
    return
  }
  func.func @transform_0(%arg0: i32, %arg1: memref<32xi32, #tpu.memory_space<smem>>, %arg2: memref<32xi32, #tpu.memory_space<smem>>) -> (i32, i32, i32) {
    %0 = arith.index_cast %arg0 : i32 to index
    %1 = memref.load %arg1[%0] : memref<32xi32, #tpu.memory_space<smem>>
    %c0_i32 = arith.constant 0 : i32
    %c0_i32_0 = arith.constant 0 : i32
    %c0_i32_1 = arith.constant 0 : i32
    return %1, %c0_i32, %c0_i32_0 : i32, i32, i32
  }
  func.func @transform_1(%arg0: i32, %arg1: memref<32xi32, #tpu.memory_space<smem>>, %arg2: memref<32xi32, #tpu.memory_space<smem>>) -> (i32, i32, i32) {
    %0 = arith.index_cast %arg0 : i32 to index
    %1 = memref.load %arg2[%0] : memref<32xi32, #tpu.memory_space<smem>>
    %c0_i32 = arith.constant 0 : i32
    %c0_i32_0 = arith.constant 0 : i32
    %c0_i32_1 = arith.constant 0 : i32
    return %1, %c0_i32, %c0_i32_0 : i32, i32, i32
  }
  func.func @transform_2(%arg0: i32, %arg1: memref<32xi32, #tpu.memory_space<smem>>, %arg2: memref<32xi32, #tpu.memory_space<smem>>) -> (i32, i32, i32) {
    %c0_i32 = arith.constant 0 : i32
    %c0_i32_0 = arith.constant 0 : i32
    %c0_i32_1 = arith.constant 0 : i32
    return %arg0, %c0_i32, %c0_i32_0 : i32, i32, i32
  }
}

module attributes {stable_mosaic.version = 11 : i64} {
  func.func @kernel(%arg0: i32, %arg1: i32, %arg2: memref<1x16x32xf32, #tpu.memory_space<vmem>>, %arg3: memref<1x1x16xf32, #tpu.memory_space<vmem>>, %arg4: memref<1x32x96xbf16, #tpu.memory_space<vmem>>, %arg5: memref<1x1x96xf32, #tpu.memory_space<vmem>>, %arg6: memref<1x32x32xbf16, #tpu.memory_space<vmem>>, %arg7: memref<1x1x32xf32, #tpu.memory_space<vmem>>, %arg8: memref<1x1x32xf32, #tpu.memory_space<vmem>>, %arg9: memref<1x1x32xf32, #tpu.memory_space<vmem>>, %arg10: memref<1x9x32x64xbf16, #tpu.memory_space<vmem>>, %arg11: memref<1x1x64xf32, #tpu.memory_space<vmem>>, %arg12: memref<1x1x64x32xbf16, #tpu.memory_space<vmem>>, %arg13: memref<1x1x32xf32, #tpu.memory_space<vmem>>, %arg14: memref<1x1x32xf32, #tpu.memory_space<vmem>>, %arg15: memref<1x1x32xf32, #tpu.memory_space<vmem>>, %arg16: memref<1x16x32xf32, #tpu.memory_space<vmem>>, %arg17: memref<16x32xf32, #tpu.memory_space<vmem>>, %arg18: memref<28x32xf32, #tpu.memory_space<vmem>>) attributes {dimension_semantics = [#tpu.dimension_semantics<parallel>, #tpu.dimension_semantics<arbitrary>], iteration_bounds = array<i64: 2, 2>, scalar_prefetch = 0 : i64, scratch_operands = 2 : i64, tpu.core_type = #tpu.core_type<tc>, window_params = [{transform_indices = @transform_0, window_bounds = array<i64: 1, 16, 32>}, {transform_indices = @transform_1, window_bounds = array<i64: 1, 1, 16>}, {transform_indices = @transform_2, window_bounds = array<i64: 1, 32, 96>}, {transform_indices = @transform_3, window_bounds = array<i64: 1, 1, 96>}, {transform_indices = @transform_4, window_bounds = array<i64: 1, 32, 32>}, {transform_indices = @transform_5, window_bounds = array<i64: 1, 1, 32>}, {transform_indices = @transform_6, window_bounds = array<i64: 1, 1, 32>}, {transform_indices = @transform_7, window_bounds = array<i64: 1, 1, 32>}, {transform_indices = @transform_8, window_bounds = array<i64: 1, 9, 32, 64>}, {transform_indices = @transform_9, window_bounds = array<i64: 1, 1, 64>}, {transform_indices = @transform_10, window_bounds = array<i64: 1, 1, 64, 32>}, {transform_indices = @transform_11, window_bounds = array<i64: 1, 1, 32>}, {transform_indices = @transform_12, window_bounds = array<i64: 1, 1, 32>}, {transform_indices = @transform_13, window_bounds = array<i64: 1, 1, 32>}, {transform_indices = @transform_14, window_bounds = array<i64: 1, 16, 32>}]} {
    %c0_i32 = arith.constant 0 : i32
    %0 = arith.cmpi eq, %arg1, %c0_i32 : i32
    %1 = arith.extui %0 : i1 to i32
    %c0_i32_0 = arith.constant 0 : i32
    %2 = arith.cmpi ne, %1, %c0_i32_0 : i32
    scf.if %2 {
      %c0_126 = arith.constant 0 : index
      %c0_127 = arith.constant 0 : index
      %c0_128 = arith.constant 0 : index
      %209 = vector.load %arg2[%c0_126, %c0_127, %c0_128] : memref<1x16x32xf32, #tpu.memory_space<vmem>>, vector<1x16x32xf32>
      %210 = vector.shape_cast %209 : vector<1x16x32xf32> to vector<16x32xf32>
      %c0_129 = arith.constant 0 : index
      %c0_130 = arith.constant 0 : index
      %211 = vector.load %arg17[%c0_129, %c0_130] : memref<16x32xf32, #tpu.memory_space<vmem>>, vector<16x32xf32>
      tpu.vector_store %arg17[%c0_129, %c0_130], %210 {strides = array<i32>} : memref<16x32xf32, #tpu.memory_space<vmem>>, vector<16x32xf32>,
    } else {
    }
    %c0 = arith.constant 0 : index
    %c0_1 = arith.constant 0 : index
    %3 = vector.load %arg17[%c0, %c0_1] : memref<16x32xf32, #tpu.memory_space<vmem>>, vector<16x32xf32>
    %c0_2 = arith.constant 0 : index
    %c0_3 = arith.constant 0 : index
    %c0_4 = arith.constant 0 : index
    %4 = vector.load %arg3[%c0_2, %c0_3, %c0_4] : memref<1x1x16xf32, #tpu.memory_space<vmem>>, vector<1x1x16xf32>
    %5 = vector.shape_cast %4 : vector<1x1x16xf32> to vector<1x16xf32>
    %6 = vector.shape_cast %5 : vector<1x16xf32> to vector<1x16xf32>
    %7 = vector.broadcast %6 : vector<1x16xf32> to vector<16x16xf32>
    %c0_5 = arith.constant 0 : index
    %c0_6 = arith.constant 0 : index
    %c0_7 = arith.constant 0 : index
    %8 = vector.load %arg6[%c0_5, %c0_6, %c0_7] : memref<1x32x32xbf16, #tpu.memory_space<vmem>>, vector<1x32x32xbf16>
    %9 = vector.shape_cast %8 : vector<1x32x32xbf16> to vector<32x32xbf16>
    %10 = arith.truncf %3 : vector<16x32xf32> to vector<16x32xbf16>
    %c0_8 = arith.constant 0 : index
    %c0_9 = arith.constant 0 : index
    %c0_10 = arith.constant 0 : index
    %11 = vector.load %arg4[%c0_8, %c0_9, %c0_10] : memref<1x32x96xbf16, #tpu.memory_space<vmem>>, vector<1x32x96xbf16>
    %12 = vector.shape_cast %11 : vector<1x32x96xbf16> to vector<32x96xbf16>
    %cst = arith.constant dense<0.000000e+00> : vector<16x96xf32>
    %13 = tpu.matmul %10, %12, %cst {dimension_numbers = #tpu.dot_dimension_numbers<[1], [0], [0], [1], [0, 0, 1, 1], [], []>} : vector<16x32xbf16>, vector<32x96xbf16>, vector<16x96xf32> -> vector<16x96xf32>
    %c0_11 = arith.constant 0 : index
    %c0_12 = arith.constant 0 : index
    %c0_13 = arith.constant 0 : index
    %14 = vector.load %arg5[%c0_11, %c0_12, %c0_13] : memref<1x1x96xf32, #tpu.memory_space<vmem>>, vector<1x1x96xf32>
    %15 = vector.shape_cast %14 : vector<1x1x96xf32> to vector<1x96xf32>
    %16 = vector.broadcast %15 : vector<1x96xf32> to vector<16x96xf32>
    %17 = arith.addf %13, %16 : vector<16x96xf32>
    %cst_14 = arith.constant 0.000000e+00 : f32
    %18 = vector.broadcast %cst_14 : f32 to vector<16x32xf32>
    %19 = vector.extract_strided_slice %17 {offsets = [0, 0], sizes = [16, 16], strides = [1, 1]} : vector<16x96xf32> to vector<16x16xf32>
    %cst_15 = arith.constant 2.500000e-01 : f32
    %20 = vector.broadcast %cst_15 : f32 to vector<16x16xf32>
    %21 = arith.mulf %19, %20 : vector<16x16xf32>
    %22 = arith.truncf %21 : vector<16x16xf32> to vector<16x16xbf16>
    %23 = vector.extract_strided_slice %17 {offsets = [0, 32], sizes = [16, 16], strides = [1, 1]} : vector<16x96xf32> to vector<16x16xf32>
    %24 = arith.truncf %23 : vector<16x16xf32> to vector<16x16xbf16>
    %25 = vector.extract_strided_slice %17 {offsets = [0, 64], sizes = [16, 16], strides = [1, 1]} : vector<16x96xf32> to vector<16x16xf32>
    %26 = arith.truncf %25 : vector<16x16xf32> to vector<16x16xbf16>
    %27 = tpu.transpose %24, [1, 0] : vector<16x16xbf16> -> vector<16x16xbf16>
    %cst_16 = arith.constant dense<0.000000e+00> : vector<16x16xf32>
    %28 = tpu.matmul %22, %27, %cst_16 {dimension_numbers = #tpu.dot_dimension_numbers<[1], [0], [0], [1], [0, 0, 1, 1], [], []>} : vector<16x16xbf16>, vector<16x16xbf16>, vector<16x16xf32> -> vector<16x16xf32>
    %29 = arith.addf %28, %7 : vector<16x16xf32>
    %cst_17 = arith.constant dense<0xFF800000> : vector<16xf32>
    %30 = vector.multi_reduction <maximumf>, %29, %cst_17 [1] : vector<16x16xf32> to vector<16xf32>
    %31 = vector.shape_cast %30 : vector<16xf32> to vector<16x1xf32>
    %32 = vector.broadcast %31 : vector<16x1xf32> to vector<16x16xf32>
    %33 = arith.subf %29, %32 : vector<16x16xf32>
    %34 = math.exp %33 : vector<16x16xf32>
    %cst_18 = arith.constant dense<0.000000e+00> : vector<16xf32>
    %35 = vector.multi_reduction <add>, %34, %cst_18 [1] : vector<16x16xf32> to vector<16xf32>
    %36 = vector.shape_cast %35 : vector<16xf32> to vector<16x1xf32>
    %37 = tpu.reciprocal %36 {approx = true} : vector<16x1xf32> -> vector<16x1xf32>
    %38 = arith.truncf %34 : vector<16x16xf32> to vector<16x16xbf16>
    %cst_19 = arith.constant dense<0.000000e+00> : vector<16x16xf32>
    %39 = tpu.matmul %38, %26, %cst_19 {dimension_numbers = #tpu.dot_dimension_numbers<[1], [0], [0], [1], [0, 0, 1, 1], [], []>} : vector<16x16xbf16>, vector<16x16xbf16>, vector<16x16xf32> -> vector<16x16xf32>
    %40 = vector.broadcast %37 : vector<16x1xf32> to vector<16x16xf32>
    %41 = arith.mulf %39, %40 : vector<16x16xf32>
    %42 = arith.truncf %41 : vector<16x16xf32> to vector<16x16xbf16>
    %43 = vector.extract_strided_slice %9 {offsets = [0, 0], sizes = [16, 32], strides = [1, 1]} : vector<32x32xbf16> to vector<16x32xbf16>
    %cst_20 = arith.constant dense<0.000000e+00> : vector<16x32xf32>
    %44 = tpu.matmul %42, %43, %cst_20 {dimension_numbers = #tpu.dot_dimension_numbers<[1], [0], [0], [1], [0, 0, 1, 1], [], []>} : vector<16x16xbf16>, vector<16x32xbf16>, vector<16x32xf32> -> vector<16x32xf32>
    %45 = arith.addf %18, %44 : vector<16x32xf32>
    %46 = vector.extract_strided_slice %17 {offsets = [0, 16], sizes = [16, 16], strides = [1, 1]} : vector<16x96xf32> to vector<16x16xf32>
    %cst_21 = arith.constant 2.500000e-01 : f32
    %47 = vector.broadcast %cst_21 : f32 to vector<16x16xf32>
    %48 = arith.mulf %46, %47 : vector<16x16xf32>
    %49 = arith.truncf %48 : vector<16x16xf32> to vector<16x16xbf16>
    %50 = vector.extract_strided_slice %17 {offsets = [0, 48], sizes = [16, 16], strides = [1, 1]} : vector<16x96xf32> to vector<16x16xf32>
    %51 = arith.truncf %50 : vector<16x16xf32> to vector<16x16xbf16>
    %52 = vector.extract_strided_slice %17 {offsets = [0, 80], sizes = [16, 16], strides = [1, 1]} : vector<16x96xf32> to vector<16x16xf32>
    %53 = arith.truncf %52 : vector<16x16xf32> to vector<16x16xbf16>
    %54 = tpu.transpose %51, [1, 0] : vector<16x16xbf16> -> vector<16x16xbf16>
    %cst_22 = arith.constant dense<0.000000e+00> : vector<16x16xf32>
    %55 = tpu.matmul %49, %54, %cst_22 {dimension_numbers = #tpu.dot_dimension_numbers<[1], [0], [0], [1], [0, 0, 1, 1], [], []>} : vector<16x16xbf16>, vector<16x16xbf16>, vector<16x16xf32> -> vector<16x16xf32>
    %56 = arith.addf %55, %7 : vector<16x16xf32>
    %cst_23 = arith.constant dense<0xFF800000> : vector<16xf32>
    %57 = vector.multi_reduction <maximumf>, %56, %cst_23 [1] : vector<16x16xf32> to vector<16xf32>
    %58 = vector.shape_cast %57 : vector<16xf32> to vector<16x1xf32>
    %59 = vector.broadcast %58 : vector<16x1xf32> to vector<16x16xf32>
    %60 = arith.subf %56, %59 : vector<16x16xf32>
    %61 = math.exp %60 : vector<16x16xf32>
    %cst_24 = arith.constant dense<0.000000e+00> : vector<16xf32>
    %62 = vector.multi_reduction <add>, %61, %cst_24 [1] : vector<16x16xf32> to vector<16xf32>
    %63 = vector.shape_cast %62 : vector<16xf32> to vector<16x1xf32>
    %64 = tpu.reciprocal %63 {approx = true} : vector<16x1xf32> -> vector<16x1xf32>
    %65 = arith.truncf %61 : vector<16x16xf32> to vector<16x16xbf16>
    %cst_25 = arith.constant dense<0.000000e+00> : vector<16x16xf32>
    %66 = tpu.matmul %65, %53, %cst_25 {dimension_numbers = #tpu.dot_dimension_numbers<[1], [0], [0], [1], [0, 0, 1, 1], [], []>} : vector<16x16xbf16>, vector<16x16xbf16>, vector<16x16xf32> -> vector<16x16xf32>
    %67 = vector.broadcast %64 : vector<16x1xf32> to vector<16x16xf32>
    %68 = arith.mulf %66, %67 : vector<16x16xf32>
    %69 = arith.truncf %68 : vector<16x16xf32> to vector<16x16xbf16>
    %70 = vector.extract_strided_slice %9 {offsets = [16, 0], sizes = [16, 32], strides = [1, 1]} : vector<32x32xbf16> to vector<16x32xbf16>
    %cst_26 = arith.constant dense<0.000000e+00> : vector<16x32xf32>
    %71 = tpu.matmul %69, %70, %cst_26 {dimension_numbers = #tpu.dot_dimension_numbers<[1], [0], [0], [1], [0, 0, 1, 1], [], []>} : vector<16x16xbf16>, vector<16x32xbf16>, vector<16x32xf32> -> vector<16x32xf32>
    %72 = arith.addf %45, %71 : vector<16x32xf32>
    %c0_27 = arith.constant 0 : index
    %c0_28 = arith.constant 0 : index
    %c0_29 = arith.constant 0 : index
    %73 = vector.load %arg7[%c0_27, %c0_28, %c0_29] : memref<1x1x32xf32, #tpu.memory_space<vmem>>, vector<1x1x32xf32>
    %74 = vector.shape_cast %73 : vector<1x1x32xf32> to vector<1x32xf32>
    %75 = vector.broadcast %74 : vector<1x32xf32> to vector<16x32xf32>
    %76 = arith.addf %72, %75 : vector<16x32xf32>
    %c0_30 = arith.constant 0 : index
    %c0_31 = arith.constant 0 : index
    %c0_32 = arith.constant 0 : index
    %77 = vector.load %arg8[%c0_30, %c0_31, %c0_32] : memref<1x1x32xf32, #tpu.memory_space<vmem>>, vector<1x1x32xf32>
    %78 = vector.shape_cast %77 : vector<1x1x32xf32> to vector<1x32xf32>
    %c0_33 = arith.constant 0 : index
    %c0_34 = arith.constant 0 : index
    %c0_35 = arith.constant 0 : index
    %79 = vector.load %arg9[%c0_33, %c0_34, %c0_35] : memref<1x1x32xf32, #tpu.memory_space<vmem>>, vector<1x1x32xf32>
    %80 = vector.shape_cast %79 : vector<1x1x32xf32> to vector<1x32xf32>
    %cst_36 = arith.constant dense<0.000000e+00> : vector<16xf32>
    %81 = vector.multi_reduction <add>, %76, %cst_36 [1] : vector<16x32xf32> to vector<16xf32>
    %82 = vector.shape_cast %81 : vector<16xf32> to vector<16x1xf32>
    %cst_37 = arith.constant 3.200000e+01 : f32
    %83 = vector.broadcast %cst_37 : f32 to vector<16x1xf32>
    %84 = arith.divf %82, %83 : vector<16x1xf32>
    %85 = vector.broadcast %84 : vector<16x1xf32> to vector<16x32xf32>
    %86 = arith.subf %76, %85 : vector<16x32xf32>
    %87 = arith.mulf %86, %86 : vector<16x32xf32>
    %cst_38 = arith.constant dense<0.000000e+00> : vector<16xf32>
    %88 = vector.multi_reduction <add>, %87, %cst_38 [1] : vector<16x32xf32> to vector<16xf32>
    %89 = vector.shape_cast %88 : vector<16xf32> to vector<16x1xf32>
    %cst_39 = arith.constant 3.200000e+01 : f32
    %90 = vector.broadcast %cst_39 : f32 to vector<16x1xf32>
    %91 = arith.divf %89, %90 : vector<16x1xf32>
    %92 = vector.broadcast %84 : vector<16x1xf32> to vector<16x32xf32>
    %93 = arith.subf %76, %92 : vector<16x32xf32>
    %cst_40 = arith.constant 9.99999974E-6 : f32
    %94 = vector.broadcast %cst_40 : f32 to vector<16x1xf32>
    %95 = arith.addf %91, %94 : vector<16x1xf32>
    %96 = math.rsqrt %95 : vector<16x1xf32>
    %97 = vector.broadcast %96 : vector<16x1xf32> to vector<16x32xf32>
    %98 = arith.mulf %93, %97 : vector<16x32xf32>
    %99 = vector.broadcast %78 : vector<1x32xf32> to vector<16x32xf32>
    %100 = arith.mulf %98, %99 : vector<16x32xf32>
    %101 = vector.broadcast %80 : vector<1x32xf32> to vector<16x32xf32>
    %102 = arith.addf %100, %101 : vector<16x32xf32>
    %103 = arith.addf %3, %102 : vector<16x32xf32>
    %c0_41 = arith.constant 0 : index
    %c0_42 = arith.constant 0 : index
    %c0_43 = arith.constant 0 : index
    %104 = vector.load %arg11[%c0_41, %c0_42, %c0_43] : memref<1x1x64xf32, #tpu.memory_space<vmem>>, vector<1x1x64xf32>
    %105 = vector.shape_cast %104 : vector<1x1x64xf32> to vector<1x64xf32>
    %cst_44 = arith.constant 0.000000e+00 : f32
    %106 = vector.broadcast %cst_44 : f32 to vector<8x32xf32>
    %c0_45 = arith.constant 0 : index
    %c0_46 = arith.constant 0 : index
    %107 = vector.load %arg18[%c0_45, %c0_46] : memref<28x32xf32, #tpu.memory_space<vmem>>, vector<8x32xf32>
    tpu.vector_store %arg18[%c0_45, %c0_46], %106 {strides = array<i32>} : memref<28x32xf32, #tpu.memory_space<vmem>>, vector<8x32xf32>,
    %cst_47 = arith.constant 0.000000e+00 : f32
    %108 = vector.broadcast %cst_47 : f32 to vector<4x32xf32>
    %c24 = arith.constant 24 : index
    %c0_48 = arith.constant 0 : index
    %109 = vector.load %arg18[%c24, %c0_48] : memref<28x32xf32, #tpu.memory_space<vmem>>, vector<4x32xf32>
    tpu.vector_store %arg18[%c24, %c0_48], %108 {strides = array<i32>} : memref<28x32xf32, #tpu.memory_space<vmem>>, vector<4x32xf32>,
    %c8 = arith.constant 8 : index
    %c0_49 = arith.constant 0 : index
    %110 = vector.load %arg18[%c8, %c0_49] : memref<28x32xf32, #tpu.memory_space<vmem>>, vector<16x32xf32>
    tpu.vector_store %arg18[%c8, %c0_49], %103 {strides = array<i32>} : memref<28x32xf32, #tpu.memory_space<vmem>>, vector<16x32xf32>,
    %cst_50 = arith.constant 0.000000e+00 : f32
    %111 = vector.broadcast %cst_50 : f32 to vector<16x64xf32>
    %c4 = arith.constant 4 : index
    %c0_51 = arith.constant 0 : index
    %112 = vector.load %arg18[%c4, %c0_51] : memref<28x32xf32, #tpu.memory_space<vmem>>, vector<16x32xf32>
    %113 = arith.truncf %112 : vector<16x32xf32> to vector<16x32xbf16>
    %c0_52 = arith.constant 0 : index
    %c0_53 = arith.constant 0 : index
    %c0_54 = arith.constant 0 : index
    %c0_55 = arith.constant 0 : index
    %114 = vector.load %arg10[%c0_52, %c0_53, %c0_54, %c0_55] : memref<1x9x32x64xbf16, #tpu.memory_space<vmem>>, vector<1x1x32x64xbf16>
    %115 = vector.shape_cast %114 : vector<1x1x32x64xbf16> to vector<32x64xbf16>
    %cst_56 = arith.constant dense<0.000000e+00> : vector<16x64xf32>
    %116 = tpu.matmul %113, %115, %cst_56 {dimension_numbers = #tpu.dot_dimension_numbers<[1], [0], [0], [1], [0, 0, 1, 1], [], []>} : vector<16x32xbf16>, vector<32x64xbf16>, vector<16x64xf32> -> vector<16x64xf32>
    %117 = arith.addf %111, %116 : vector<16x64xf32>
    %c5 = arith.constant 5 : index
    %c0_57 = arith.constant 0 : index
    %118 = vector.load %arg18[%c5, %c0_57] : memref<28x32xf32, #tpu.memory_space<vmem>>, vector<16x32xf32>
    %119 = arith.truncf %118 : vector<16x32xf32> to vector<16x32xbf16>
    %c0_58 = arith.constant 0 : index
    %c1 = arith.constant 1 : index
    %c0_59 = arith.constant 0 : index
    %c0_60 = arith.constant 0 : index
    %120 = vector.load %arg10[%c0_58, %c1, %c0_59, %c0_60] : memref<1x9x32x64xbf16, #tpu.memory_space<vmem>>, vector<1x1x32x64xbf16>
    %121 = vector.shape_cast %120 : vector<1x1x32x64xbf16> to vector<32x64xbf16>
    %cst_61 = arith.constant dense<0.000000e+00> : vector<16x64xf32>
    %122 = tpu.matmul %119, %121, %cst_61 {dimension_numbers = #tpu.dot_dimension_numbers<[1], [0], [0], [1], [0, 0, 1, 1], [], []>} : vector<16x32xbf16>, vector<32x64xbf16>, vector<16x64xf32> -> vector<16x64xf32>
    %123 = arith.addf %117, %122 : vector<16x64xf32>
    %c6 = arith.constant 6 : index
    %c0_62 = arith.constant 0 : index
    %124 = vector.load %arg18[%c6, %c0_62] : memref<28x32xf32, #tpu.memory_space<vmem>>, vector<16x32xf32>
    %125 = arith.truncf %124 : vector<16x32xf32> to vector<16x32xbf16>
    %c0_63 = arith.constant 0 : index
    %c2 = arith.constant 2 : index
    %c0_64 = arith.constant 0 : index
    %c0_65 = arith.constant 0 : index
    %126 = vector.load %arg10[%c0_63, %c2, %c0_64, %c0_65] : memref<1x9x32x64xbf16, #tpu.memory_space<vmem>>, vector<1x1x32x64xbf16>
    %127 = vector.shape_cast %126 : vector<1x1x32x64xbf16> to vector<32x64xbf16>
    %cst_66 = arith.constant dense<0.000000e+00> : vector<16x64xf32>
    %128 = tpu.matmul %125, %127, %cst_66 {dimension_numbers = #tpu.dot_dimension_numbers<[1], [0], [0], [1], [0, 0, 1, 1], [], []>} : vector<16x32xbf16>, vector<32x64xbf16>, vector<16x64xf32> -> vector<16x64xf32>
    %129 = arith.addf %123, %128 : vector<16x64xf32>
    %c7 = arith.constant 7 : index
    %c0_67 = arith.constant 0 : index
    %130 = vector.load %arg18[%c7, %c0_67] : memref<28x32xf32, #tpu.memory_space<vmem>>, vector<16x32xf32>
    %131 = arith.truncf %130 : vector<16x32xf32> to vector<16x32xbf16>
    %c0_68 = arith.constant 0 : index
    %c3 = arith.constant 3 : index
    %c0_69 = arith.constant 0 : index
    %c0_70 = arith.constant 0 : index
    %132 = vector.load %arg10[%c0_68, %c3, %c0_69, %c0_70] : memref<1x9x32x64xbf16, #tpu.memory_space<vmem>>, vector<1x1x32x64xbf16>
    %133 = vector.shape_cast %132 : vector<1x1x32x64xbf16> to vector<32x64xbf16>
    %cst_71 = arith.constant dense<0.000000e+00> : vector<16x64xf32>
    %134 = tpu.matmul %131, %133, %cst_71 {dimension_numbers = #tpu.dot_dimension_numbers<[1], [0], [0], [1], [0, 0, 1, 1], [], []>} : vector<16x32xbf16>, vector<32x64xbf16>, vector<16x64xf32> -> vector<16x64xf32>
    %135 = arith.addf %129, %134 : vector<16x64xf32>
    %c8_72 = arith.constant 8 : index
    %c0_73 = arith.constant 0 : index
    %136 = vector.load %arg18[%c8_72, %c0_73] : memref<28x32xf32, #tpu.memory_space<vmem>>, vector<16x32xf32>
    %137 = arith.truncf %136 : vector<16x32xf32> to vector<16x32xbf16>
    %c0_74 = arith.constant 0 : index
    %c4_75 = arith.constant 4 : index
    %c0_76 = arith.constant 0 : index
    %c0_77 = arith.constant 0 : index
    %138 = vector.load %arg10[%c0_74, %c4_75, %c0_76, %c0_77] : memref<1x9x32x64xbf16, #tpu.memory_space<vmem>>, vector<1x1x32x64xbf16>
    %139 = vector.shape_cast %138 : vector<1x1x32x64xbf16> to vector<32x64xbf16>
    %cst_78 = arith.constant dense<0.000000e+00> : vector<16x64xf32>
    %140 = tpu.matmul %137, %139, %cst_78 {dimension_numbers = #tpu.dot_dimension_numbers<[1], [0], [0], [1], [0, 0, 1, 1], [], []>} : vector<16x32xbf16>, vector<32x64xbf16>, vector<16x64xf32> -> vector<16x64xf32>
    %141 = arith.addf %135, %140 : vector<16x64xf32>
    %c9 = arith.constant 9 : index
    %c0_79 = arith.constant 0 : index
    %142 = vector.load %arg18[%c9, %c0_79] : memref<28x32xf32, #tpu.memory_space<vmem>>, vector<16x32xf32>
    %143 = arith.truncf %142 : vector<16x32xf32> to vector<16x32xbf16>
    %c0_80 = arith.constant 0 : index
    %c5_81 = arith.constant 5 : index
    %c0_82 = arith.constant 0 : index
    %c0_83 = arith.constant 0 : index
    %144 = vector.load %arg10[%c0_80, %c5_81, %c0_82, %c0_83] : memref<1x9x32x64xbf16, #tpu.memory_space<vmem>>, vector<1x1x32x64xbf16>
    %145 = vector.shape_cast %144 : vector<1x1x32x64xbf16> to vector<32x64xbf16>
    %cst_84 = arith.constant dense<0.000000e+00> : vector<16x64xf32>
    %146 = tpu.matmul %143, %145, %cst_84 {dimension_numbers = #tpu.dot_dimension_numbers<[1], [0], [0], [1], [0, 0, 1, 1], [], []>} : vector<16x32xbf16>, vector<32x64xbf16>, vector<16x64xf32> -> vector<16x64xf32>
    %147 = arith.addf %141, %146 : vector<16x64xf32>
    %c10 = arith.constant 10 : index
    %c0_85 = arith.constant 0 : index
    %148 = vector.load %arg18[%c10, %c0_85] : memref<28x32xf32, #tpu.memory_space<vmem>>, vector<16x32xf32>
    %149 = arith.truncf %148 : vector<16x32xf32> to vector<16x32xbf16>
    %c0_86 = arith.constant 0 : index
    %c6_87 = arith.constant 6 : index
    %c0_88 = arith.constant 0 : index
    %c0_89 = arith.constant 0 : index
    %150 = vector.load %arg10[%c0_86, %c6_87, %c0_88, %c0_89] : memref<1x9x32x64xbf16, #tpu.memory_space<vmem>>, vector<1x1x32x64xbf16>
    %151 = vector.shape_cast %150 : vector<1x1x32x64xbf16> to vector<32x64xbf16>
    %cst_90 = arith.constant dense<0.000000e+00> : vector<16x64xf32>
    %152 = tpu.matmul %149, %151, %cst_90 {dimension_numbers = #tpu.dot_dimension_numbers<[1], [0], [0], [1], [0, 0, 1, 1], [], []>} : vector<16x32xbf16>, vector<32x64xbf16>, vector<16x64xf32> -> vector<16x64xf32>
    %153 = arith.addf %147, %152 : vector<16x64xf32>
    %c11 = arith.constant 11 : index
    %c0_91 = arith.constant 0 : index
    %154 = vector.load %arg18[%c11, %c0_91] : memref<28x32xf32, #tpu.memory_space<vmem>>, vector<16x32xf32>
    %155 = arith.truncf %154 : vector<16x32xf32> to vector<16x32xbf16>
    %c0_92 = arith.constant 0 : index
    %c7_93 = arith.constant 7 : index
    %c0_94 = arith.constant 0 : index
    %c0_95 = arith.constant 0 : index
    %156 = vector.load %arg10[%c0_92, %c7_93, %c0_94, %c0_95] : memref<1x9x32x64xbf16, #tpu.memory_space<vmem>>, vector<1x1x32x64xbf16>
    %157 = vector.shape_cast %156 : vector<1x1x32x64xbf16> to vector<32x64xbf16>
    %cst_96 = arith.constant dense<0.000000e+00> : vector<16x64xf32>
    %158 = tpu.matmul %155, %157, %cst_96 {dimension_numbers = #tpu.dot_dimension_numbers<[1], [0], [0], [1], [0, 0, 1, 1], [], []>} : vector<16x32xbf16>, vector<32x64xbf16>, vector<16x64xf32> -> vector<16x64xf32>
    %159 = arith.addf %153, %158 : vector<16x64xf32>
    %c12 = arith.constant 12 : index
    %c0_97 = arith.constant 0 : index
    %160 = vector.load %arg18[%c12, %c0_97] : memref<28x32xf32, #tpu.memory_space<vmem>>, vector<16x32xf32>
    %161 = arith.truncf %160 : vector<16x32xf32> to vector<16x32xbf16>
    %c0_98 = arith.constant 0 : index
    %c8_99 = arith.constant 8 : index
    %c0_100 = arith.constant 0 : index
    %c0_101 = arith.constant 0 : index
    %162 = vector.load %arg10[%c0_98, %c8_99, %c0_100, %c0_101] : memref<1x9x32x64xbf16, #tpu.memory_space<vmem>>, vector<1x1x32x64xbf16>
    %163 = vector.shape_cast %162 : vector<1x1x32x64xbf16> to vector<32x64xbf16>
    %cst_102 = arith.constant dense<0.000000e+00> : vector<16x64xf32>
    %164 = tpu.matmul %161, %163, %cst_102 {dimension_numbers = #tpu.dot_dimension_numbers<[1], [0], [0], [1], [0, 0, 1, 1], [], []>} : vector<16x32xbf16>, vector<32x64xbf16>, vector<16x64xf32> -> vector<16x64xf32>
    %165 = arith.addf %159, %164 : vector<16x64xf32>
    %166 = vector.broadcast %105 : vector<1x64xf32> to vector<16x64xf32>
    %167 = arith.addf %165, %166 : vector<16x64xf32>
    %cst_103 = arith.constant 0.000000e+00 : f32
    %168 = vector.broadcast %cst_103 : f32 to vector<16x64xf32>
    %169 = arith.maximumf %167, %168 : vector<16x64xf32>
    %c0_104 = arith.constant 0 : index
    %c0_105 = arith.constant 0 : index
    %c0_106 = arith.constant 0 : index
    %170 = vector.load %arg13[%c0_104, %c0_105, %c0_106] : memref<1x1x32xf32, #tpu.memory_space<vmem>>, vector<1x1x32xf32>
    %171 = vector.shape_cast %170 : vector<1x1x32xf32> to vector<1x32xf32>
    %172 = arith.truncf %169 : vector<16x64xf32> to vector<16x64xbf16>
    %c0_107 = arith.constant 0 : index
    %c0_108 = arith.constant 0 : index
    %c0_109 = arith.constant 0 : index
    %c0_110 = arith.constant 0 : index
    %173 = vector.load %arg12[%c0_107, %c0_108, %c0_109, %c0_110] : memref<1x1x64x32xbf16, #tpu.memory_space<vmem>>, vector<1x1x64x32xbf16>
    %174 = vector.shape_cast %173 : vector<1x1x64x32xbf16> to vector<64x32xbf16>
    %cst_111 = arith.constant dense<0.000000e+00> : vector<16x32xf32>
    %175 = tpu.matmul %172, %174, %cst_111 {dimension_numbers = #tpu.dot_dimension_numbers<[1], [0], [0], [1], [0, 0, 1, 1], [], []>} : vector<16x64xbf16>, vector<64x32xbf16>, vector<16x32xf32> -> vector<16x32xf32>
    %176 = vector.broadcast %171 : vector<1x32xf32> to vector<16x32xf32>
    %177 = arith.addf %175, %176 : vector<16x32xf32>
    %c0_112 = arith.constant 0 : index
    %c0_113 = arith.constant 0 : index
    %c0_114 = arith.constant 0 : index
    %178 = vector.load %arg14[%c0_112, %c0_113, %c0_114] : memref<1x1x32xf32, #tpu.memory_space<vmem>>, vector<1x1x32xf32>
    %179 = vector.shape_cast %178 : vector<1x1x32xf32> to vector<1x32xf32>
    %c0_115 = arith.constant 0 : index
    %c0_116 = arith.constant 0 : index
    %c0_117 = arith.constant 0 : index
    %180 = vector.load %arg15[%c0_115, %c0_116, %c0_117] : memref<1x1x32xf32, #tpu.memory_space<vmem>>, vector<1x1x32xf32>
    %181 = vector.shape_cast %180 : vector<1x1x32xf32> to vector<1x32xf32>
    %cst_118 = arith.constant dense<0.000000e+00> : vector<16xf32>
    %182 = vector.multi_reduction <add>, %177, %cst_118 [1] : vector<16x32xf32> to vector<16xf32>
    %183 = vector.shape_cast %182 : vector<16xf32> to vector<16x1xf32>
    %cst_119 = arith.constant 3.200000e+01 : f32
    %184 = vector.broadcast %cst_119 : f32 to vector<16x1xf32>
    %185 = arith.divf %183, %184 : vector<16x1xf32>
    %186 = vector.broadcast %185 : vector<16x1xf32> to vector<16x32xf32>
    %187 = arith.subf %177, %186 : vector<16x32xf32>
    %188 = arith.mulf %187, %187 : vector<16x32xf32>
    %cst_120 = arith.constant dense<0.000000e+00> : vector<16xf32>
    %189 = vector.multi_reduction <add>, %188, %cst_120 [1] : vector<16x32xf32> to vector<16xf32>
    %190 = vector.shape_cast %189 : vector<16xf32> to vector<16x1xf32>
    %cst_121 = arith.constant 3.200000e+01 : f32
    %191 = vector.broadcast %cst_121 : f32 to vector<16x1xf32>
    %192 = arith.divf %190, %191 : vector<16x1xf32>
    %193 = vector.broadcast %185 : vector<16x1xf32> to vector<16x32xf32>
    %194 = arith.subf %177, %193 : vector<16x32xf32>
    %cst_122 = arith.constant 9.99999974E-6 : f32
    %195 = vector.broadcast %cst_122 : f32 to vector<16x1xf32>
    %196 = arith.addf %192, %195 : vector<16x1xf32>
    %197 = math.rsqrt %196 : vector<16x1xf32>
    %198 = vector.broadcast %197 : vector<16x1xf32> to vector<16x32xf32>
    %199 = arith.mulf %194, %198 : vector<16x32xf32>
    %200 = vector.broadcast %179 : vector<1x32xf32> to vector<16x32xf32>
    %201 = arith.mulf %199, %200 : vector<16x32xf32>
    %202 = vector.broadcast %181 : vector<1x32xf32> to vector<16x32xf32>
    %203 = arith.addf %201, %202 : vector<16x32xf32>
    %204 = arith.addf %103, %203 : vector<16x32xf32>
    %c0_123 = arith.constant 0 : index
    %c0_124 = arith.constant 0 : index
    %205 = vector.load %arg17[%c0_123, %c0_124] : memref<16x32xf32, #tpu.memory_space<vmem>>, vector<16x32xf32>
    tpu.vector_store %arg17[%c0_123, %c0_124], %204 {strides = array<i32>} : memref<16x32xf32, #tpu.memory_space<vmem>>, vector<16x32xf32>,
    %c1_i32 = arith.constant 1 : i32
    %206 = arith.cmpi eq, %arg1, %c1_i32 : i32
    %207 = arith.extui %206 : i1 to i32
    %c0_i32_125 = arith.constant 0 : i32
    %208 = arith.cmpi ne, %207, %c0_i32_125 : i32
    scf.if %208 {
      %c0_126 = arith.constant 0 : index
      %c0_127 = arith.constant 0 : index
      %c0_128 = arith.constant 0 : index
      %209 = vector.load %arg16[%c0_126, %c0_127, %c0_128] : memref<1x16x32xf32, #tpu.memory_space<vmem>>, vector<1x16x32xf32>
      %210 = vector.shape_cast %209 : vector<1x16x32xf32> to vector<16x32xf32>
      %211 = vector.shape_cast %204 : vector<16x32xf32> to vector<1x16x32xf32>
      tpu.vector_store %arg16[%c0_126, %c0_127, %c0_128], %211 {strides = array<i32>} : memref<1x16x32xf32, #tpu.memory_space<vmem>>, vector<1x16x32xf32>,
    } else {
    }
    return
  }
  func.func @transform_0(%arg0: i32, %arg1: i32) -> (i32, i32, i32) {
    %c0_i32 = arith.constant 0 : i32
    %c0_i32_0 = arith.constant 0 : i32
    %c0_i32_1 = arith.constant 0 : i32
    return %arg0, %c0_i32, %c0_i32_0 : i32, i32, i32
  }
  func.func @transform_1(%arg0: i32, %arg1: i32) -> (i32, i32, i32) {
    %c0_i32 = arith.constant 0 : i32
    %c0_i32_0 = arith.constant 0 : i32
    %c0_i32_1 = arith.constant 0 : i32
    return %arg0, %c0_i32, %c0_i32_0 : i32, i32, i32
  }
  func.func @transform_2(%arg0: i32, %arg1: i32) -> (i32, i32, i32) {
    %c0_i32 = arith.constant 0 : i32
    %c0_i32_0 = arith.constant 0 : i32
    %c0_i32_1 = arith.constant 0 : i32
    return %arg1, %c0_i32, %c0_i32_0 : i32, i32, i32
  }
  func.func @transform_3(%arg0: i32, %arg1: i32) -> (i32, i32, i32) {
    %c0_i32 = arith.constant 0 : i32
    %c0_i32_0 = arith.constant 0 : i32
    %c0_i32_1 = arith.constant 0 : i32
    return %arg1, %c0_i32, %c0_i32_0 : i32, i32, i32
  }
  func.func @transform_4(%arg0: i32, %arg1: i32) -> (i32, i32, i32) {
    %c0_i32 = arith.constant 0 : i32
    %c0_i32_0 = arith.constant 0 : i32
    %c0_i32_1 = arith.constant 0 : i32
    return %arg1, %c0_i32, %c0_i32_0 : i32, i32, i32
  }
  func.func @transform_5(%arg0: i32, %arg1: i32) -> (i32, i32, i32) {
    %c0_i32 = arith.constant 0 : i32
    %c0_i32_0 = arith.constant 0 : i32
    %c0_i32_1 = arith.constant 0 : i32
    return %arg1, %c0_i32, %c0_i32_0 : i32, i32, i32
  }
  func.func @transform_6(%arg0: i32, %arg1: i32) -> (i32, i32, i32) {
    %c0_i32 = arith.constant 0 : i32
    %c0_i32_0 = arith.constant 0 : i32
    %c0_i32_1 = arith.constant 0 : i32
    return %arg1, %c0_i32, %c0_i32_0 : i32, i32, i32
  }
  func.func @transform_7(%arg0: i32, %arg1: i32) -> (i32, i32, i32) {
    %c0_i32 = arith.constant 0 : i32
    %c0_i32_0 = arith.constant 0 : i32
    %c0_i32_1 = arith.constant 0 : i32
    return %arg1, %c0_i32, %c0_i32_0 : i32, i32, i32
  }
  func.func @transform_8(%arg0: i32, %arg1: i32) -> (i32, i32, i32, i32) {
    %c0_i32 = arith.constant 0 : i32
    %c0_i32_0 = arith.constant 0 : i32
    %c0_i32_1 = arith.constant 0 : i32
    %c0_i32_2 = arith.constant 0 : i32
    return %arg1, %c0_i32, %c0_i32_0, %c0_i32_1 : i32, i32, i32, i32
  }
  func.func @transform_9(%arg0: i32, %arg1: i32) -> (i32, i32, i32) {
    %c0_i32 = arith.constant 0 : i32
    %c0_i32_0 = arith.constant 0 : i32
    %c0_i32_1 = arith.constant 0 : i32
    return %arg1, %c0_i32, %c0_i32_0 : i32, i32, i32
  }
  func.func @transform_10(%arg0: i32, %arg1: i32) -> (i32, i32, i32, i32) {
    %c0_i32 = arith.constant 0 : i32
    %c0_i32_0 = arith.constant 0 : i32
    %c0_i32_1 = arith.constant 0 : i32
    %c0_i32_2 = arith.constant 0 : i32
    return %arg1, %c0_i32, %c0_i32_0, %c0_i32_1 : i32, i32, i32, i32
  }
  func.func @transform_11(%arg0: i32, %arg1: i32) -> (i32, i32, i32) {
    %c0_i32 = arith.constant 0 : i32
    %c0_i32_0 = arith.constant 0 : i32
    %c0_i32_1 = arith.constant 0 : i32
    return %arg1, %c0_i32, %c0_i32_0 : i32, i32, i32
  }
  func.func @transform_12(%arg0: i32, %arg1: i32) -> (i32, i32, i32) {
    %c0_i32 = arith.constant 0 : i32
    %c0_i32_0 = arith.constant 0 : i32
    %c0_i32_1 = arith.constant 0 : i32
    return %arg1, %c0_i32, %c0_i32_0 : i32, i32, i32
  }
  func.func @transform_13(%arg0: i32, %arg1: i32) -> (i32, i32, i32) {
    %c0_i32 = arith.constant 0 : i32
    %c0_i32_0 = arith.constant 0 : i32
    %c0_i32_1 = arith.constant 0 : i32
    return %arg1, %c0_i32, %c0_i32_0 : i32, i32, i32
  }
  func.func @transform_14(%arg0: i32, %arg1: i32) -> (i32, i32, i32) {
    %c0_i32 = arith.constant 0 : i32
    %c0_i32_0 = arith.constant 0 : i32
    %c0_i32_1 = arith.constant 0 : i32
    return %arg0, %c0_i32, %c0_i32_0 : i32, i32, i32
  }
}

</mosaic_0001>

<bundles_post_ra>
// kernel: encoder_forward.2
= control target key start
LH: loop header
LB: loop body
LE: loop exit
PB: predicated region body
PF: predicated region fallthrough
CT: control target
= control target key end

     0   :  { %s325_s0 = inlined_call_operand.vmem [shape: s32[32], index: 0, kind: input, shape index: {}]   ;;  %s326_s2 = inlined_call_operand.vmem [shape: f32[40,1,32], index: 2, kind: input, shape index: {}]   ;;  %s327_s3 = inlined_call_operand.vmem [shape: f32[33,1,32], index: 3, kind: input, shape index: {}]   ;;  %s328_s4 = inlined_call_operand.vmem [shape: f32[32,1,32], index: 4, kind: output, shape index: {}]   ;;  %s329_s1 = inlined_call_operand.vmem [shape: s32[32], index: 1, kind: input, shape index: {}]  }
   0x1   :  { %s9_s17 = sshll.u32 %s325_s0, 4  ;;  %s13_s20 = sshll.u32 %s329_s1, 4  ;;  %s10_s17 = int_to_ptr.vmem [resolvable:$true] %s9_s17  ;;  %s14_s20 = int_to_ptr.vmem [resolvable:$true] %s13_s20 }
   0x2   :  { %s249_s21 = scalar_lea.vmem %s10_s17, 16  ;;  %p254_p1 = scmp.lt.s32.totalorder %s10_s17, %s10_s17 }
   0x3   :  { %p250_p0 = scmp.ne.s32.totalorder %s10_s17, %s249_s21  ;;  %p255_p2 = scmp.lt.s32.totalorder %s249_s21, %s249_s21 }
   0x5   :  { %p256_p3 = por %p255_p2, %p254_p1 }
   0x7   :  { %p257_p4 = pnand %p256_p3, %p250_p0 }
   0x9   :  { %260 = shalt.err (!%p257_p4)  }
   0xa   :  { %s283_s22 = smov [#allocation3]   ;;  %s261_s23 = scalar_lea.vmem %s14_s20, 16 }
   0xb   :  { %12 = dma.vmem_to_smem %s10_s17, 16, %s283_s22, [#allocation2] }
   0xc   :  { %p262_p5 = scmp.ne.s32.totalorder %s14_s20, %s261_s23  ;;  %p266_p6 = scmp.lt.s32.totalorder %s14_s20, %s14_s20 }
   0xd   :  { %p267_p7 = scmp.lt.s32.totalorder %s261_s23, %s261_s23 }
   0xf   :  { %p268_p8 = por %p267_p7, %p266_p6 }
  0x11   :  { %p269_p9 = pnand %p268_p8, %p262_p5 }
  0x13   :  { %272 = shalt.err (!%p269_p9)  }
  0x14   :  { %s284_s0 = smov [#allocation4]  }
  0x15   :  { %16 = dma.vmem_to_smem %s14_s20, 16, %s284_s0, [#allocation2] }
  0x16   :  { %277 = dma.done.wait [#allocation2], 32 }
  0x17   :  { %278 = vsyncadd [#allocation2], 4294967264 }
  0x18   :  { %18 = sfence }
  0x19   :  { %s279_s1 = smov 0  }
  0x1a LB: > { %s232_s24 = sadd.s32 4294967295, %s281_s1   ;;  %p236_p10 = scmp.ge.s32.totalorder %s281_s1, 1  ;;  %s281_s1 = sphi %s279_s1, %s24_s1  }
  0x1b   : > { %p138_p11 = scmp.lt.s32.totalorder %s281_s1, 33 }
  0x1d   : > { %p139_p12 = pnand %p236_p10, %p138_p11 }
  0x1e   : > { %s161_s25 = sld [smem:[#allocation3 + %s232_s24]] (!%p139_p12)  ;;  %p171_p13 = scmp.lt.s32.totalorder (!%p139_p12), %s232_s24, 31  ;;  %vm177_vm0 = vcmask (!%p139_p12), 253952  }
  0x1f   : > { %142 = sbr.rel (%p139_p12) target bundleno = 45 (0x2d), region = 28  ;;  %s166_s26 = sld [smem:[#allocation4 + %s232_s24]] (!%p139_p12) }
  0x24   : > { %p162_p0 = scmp.lt.s32.totalorder (!%p139_p12), %s161_s25, 39 }
  0x25   : > { %p167_p1 = scmp.lt.s32.totalorder (!%p139_p12), %s166_s26, 32 }
  0x26   : > { %s331_s24 = smov (!%p171_p13, %s232_s24), 31  ;;  %s333_s25 = smov (!%p162_p0, %s161_s25), 39 }
  0x27   : > { %s335_s26 = smov (!%p167_p1, %s166_s26), 32  ;;  %s164_s29 = scalar_lea.vmem %s326_s2, %s333_s25 }
  0x28   : > { %s169_s6 = scalar_lea.vmem %s327_s3, %s335_s26  ;;  %v174_v0 = vld [vmem:[%s164_s29] sm:$0x1]  ;;  %s173_s9 = scalar_lea.vmem %s328_s4, %s331_s24 }
  0x29   : > { %v175_v1 = vld [vmem:[%s169_s6] sm:$0x1] }
  0x2a   : > { %v176_v2 = vadd.f32 %v175_v1, %v174_v0 }
  0x2c   : > { %178 = vst.msk [vmem:[%s173_s9] sm:$0x1] %vm177_vm0, %v176_v2 }
  0x2d PF: > { %s24_s1 = sadd.s32 1, %s281_s1  }
  0x2e   : > { %p21_p2 = scmp.ge.s32.totalorder %s24_s1, 34  }
  0x30   :  { %23 = sbr.rel (!%p21_p2) target bundleno = 26 (0x1a), region = 61 }

// kernel: encoder_forward.3
= control target key start
LH: loop header
LB: loop body
LE: loop exit
PB: predicated region body
PF: predicated region fallthrough
CT: control target
= control target key end

     0   :  { %s3145_s0 = inlined_call_operand.vmem [shape: f32[2,16,32], index: 0, kind: input, shape index: {}]   ;;  %s3146_s1 = inlined_call_operand.vmem [shape: f32[2,1,16], index: 1, kind: input, shape index: {}]   ;;  %s3147_s2 = inlined_call_operand.vmem [shape: bf16[2,32,96], index: 2, kind: input, shape index: {}]   ;;  %s3148_s3 = inlined_call_operand.vmem [shape: f32[2,1,96], index: 3, kind: input, shape index: {}]   ;;  %s3149_s4 = inlined_call_operand.vmem [shape: bf16[2,32,32], index: 4, kind: input, shape index: {}]   ;;  %s3150_s5 = inlined_call_operand.vmem [shape: f32[2,1,32], index: 5, kind: input, shape index: {}]   ;;  %s3151_s6 = inlined_call_operand.vmem [shape: f32[2,1,32], index: 6, kind: input, shape index: {}]   ;;  %s3152_s7 = inlined_call_operand.vmem [shape: f32[2,1,32], index: 7, kind: input, shape index: {}]   ;;  %s3153_s8 = inlined_call_operand.vmem [shape: bf16[2,9,32,64], index: 8, kind: input, shape index: {}]   ;;  %s3154_s9 = inlined_call_operand.vmem [shape: f32[2,1,64], index: 9, kind: input, shape index: {}]   ;;  %s3155_s10 = inlined_call_operand.vmem [shape: bf16[2,1,64,32], index: 10, kind: input, shape index: {}]   ;;  %s3156_s11 = inlined_call_operand.vmem [shape: f32[2,1,32], index: 11, kind: input, shape index: {}]   ;;  %s3157_s12 = inlined_call_operand.vmem [shape: f32[2,1,32], index: 12, kind: input, shape index: {}]   ;;  %s3158_s13 = inlined_call_operand.vmem [shape: f32[2,1,32], index: 13, kind: input, shape index: {}]   ;;  %s3159_s14 = inlined_call_operand.hbm [shape: f32[2,16,32], index: 14, kind: output, shape index: {}]  }
   0x1   :  { %3175 = sst [smem:[#allocation20_spill]] %s3145_s0 }
   0x2   :  { %3176 = sst [smem:[#allocation21_spill]] %s3146_s1 }
   0x3   :  { %3177 = sst [smem:[#allocation22_spill]] %s3147_s2 }
   0x4   :  { %3178 = sst [smem:[#allocation23_spill]] %s3149_s4 }
   0x5   :  { %3179 = sst [smem:[#allocation24_spill]] %s3152_s7 }
   0x6   :  { %3180 = sst [smem:[#allocation25_spill]] %s3154_s9 }
   0x7   :  { %3181 = sst [smem:[#allocation26_spill]] %s3157_s12 }
   0x8   :  { %3182 = sst [smem:[#allocation27_spill]] %s3158_s13 }
   0x9   :  { %3183 = sst [smem:[#allocation28_spill]] %s3159_s14 }
   0xa   :  { %19 = vsyncpa [#allocation5], 0 }
   0xb   :  { %21 = vsyncpa [#allocation5 + $0x1], 0  ;;  %s2739_s29 = smov 0   ;;  %s2741_s30 = smov 0  }
   0xc   :  { %s2743_s15 = smov 0   ;;  %s2745_s16 = smov 0  }
   0xd   :  { %s2747_s17 = smov 0   ;;  %s2749_s18 = smov 0  }
   0xe   :  { %s2751_s19 = smov 0   ;;  %s2753_s20 = smov 0  }
   0xf LB: > { %3184 = sst [smem:[#allocation7_spill]] %s2624_s29  ;;  %s2141_s21 = sadd.s32 4294967295, %s2652_s20   ;;  %s2652_s20 = sphi %s2753_s20, %s27_s20   ;;  %s2648_s19 = sphi %s2751_s19, %s3235_s19   ;;  %s2644_s18 = sphi %s2749_s18, %s3234_s18   ;;  %s2640_s17 = sphi %s2747_s17, %s3233_s17   ;;  %s2636_s16 = sphi %s2745_s16, %s3232_s16   ;;  %s2632_s15 = sphi %s2743_s15, %s3231_s15   ;;  %s2628_s30 = sphi %s2741_s30, %s3230_s30   ;;  %s2624_s29 = sphi %s2739_s29, %s3229_s29  }
  0x10   : > { %3185 = sst [smem:[#allocation8_spill]] %s2628_s30  ;;  %s2142_s22 = sadd.s32 4294967294, %s2652_s20  }
  0x11   : > { %3186 = sst [smem:[#allocation9_spill]] %s2632_s15  ;;  %s36_s23 = sadd.s32 1, %s2644_s18 }
  0x12   : > { %3187 = sst [smem:[#allocation10_spill]] %s2636_s16  ;;  %p37_p0 = scmp.ge.s32.totalorder %s36_s23, 2 }
  0x13   : > { %3188 = sst [smem:[#allocation11_spill]] %s2640_s17  ;;  %s39_s24 = sadd.s32 1, %s2648_s19 }
  0x14   : > { %3189 = sst [smem:[#allocation12_spill]] %s2644_s18  ;;  %p420_p1 = scmp.ne.s32.totalorder %s2632_s15, %s2628_s30 }
  0x15   : > { %3190 = sst [smem:[#allocation13_spill]] %s2648_s19  ;;  %p421_p2 = scmp.eq.s32.totalorder %s2141_s21, 3 }
  0x16   : > { %3191 = sst [smem:[#allocation14_spill]] %s2652_s20  ;;  %s3237_s23 = smov (%p37_p0, %s36_s23), 0 }
  0x17   : > { %3192 = sst [smem:[#allocation15_spill]] %s3237_s23  ;;  %s3239_s24 = smov (!%p37_p0, %s39_s24), %s2648_s19 }
  0x18   : > { %p2788_p3 = por %p421_p2, %p420_p1  ;;  %p426_p4 = scmp.ne.s32.totalorder %s2628_s30, %s2624_s29 }
  0x19   : > { %p41_p5 = scmp.ge.s32.totalorder %s3239_s24, 2  ;;  %p427_p6 = scmp.eq.s32.totalorder %s2142_s22, 3 }
  0x1a   : > { %s3193_s25 = scalar_select %p2788_p3, 1, 0 }
  0x1b   : > { %p2145_p7 = scmp.ge.s32.totalorder %s2652_s20, 1  ;;  %p539_p8 = scmp.lt.s32.totalorder %s2652_s20, 5 }
  0x1c   : > { %3194 = sst [smem:[#allocation16_spill]] %s3193_s25  ;;  %s3241_s24 = smov (%p41_p5, %s3239_s24), 0 }
  0x1d   : > { %3195 = sst [smem:[#allocation17_spill]] %s3241_s24  ;;  %p2798_p9 = por %p427_p6, %p426_p4 }
  0x1e   : > { %p540_p10 = pnand %p2145_p7, %p539_p8  ;;  %s407_s27 = ssub.s32 %s2648_s19, %s3241_s24 }
  0x1f   : > { %s3196_s26 = scalar_select %p2798_p9, 1, 0 }
  0x20   : > { %s410_s28 = sadd.s32 1, %s2632_s15  ;;  %p408_p11 = scmp.eq.s32.totalorder %s407_s27, 0 }
  0x21   : > { %3197 = sst [smem:[#allocation18_spill]] %s3196_s26  ;;  %543 = sbr.rel (%p540_p10) target bundleno = 2371 (0x943), region = 76 }
  0x22   : > { %s2806_s21 = scalar_select %p408_p11, %s2632_s15, %s410_s28  }
  0x23   : > { %s3163_s22 = sand.u32 (!%p540_p10), 1, %s2628_s30   ;;  %p632_p12 = scmp.lt.s32.totalorder (!%p540_p10), %s2640_s17, 1 }
  0x24   : > { %3198 = sst [smem:[#allocation19_spill]] %s2806_s21  ;;  %s2146_s23 = sshll.u32 (!%p540_p10), %s3163_s22, 4 }
  0x25   : > { %p640_p13 = scmp.lt.s32.totalorder (!%p540_p10), %s2636_s16, 1  ;;  %s3200_s0 = sld [smem:[#allocation20_spill]] (!%p540_p10) }
  0x26   : > { %s3201_s2 = sld [smem:[#allocation22_spill]] (!%p540_p10)  ;;  %s3202_s4 = sld [smem:[#allocation23_spill]] (!%p540_p10) }
  0x27   : > { %s3206_s9 = sld [smem:[#allocation27_spill]] (!%p540_p10)  ;;  %s2880_s13 = scalar_lea.vmem (!%p540_p10), [#allocation4], %s2146_s23 }
  0x28   : > { %s2814_s18 = scalar_select %p632_p12, %s2640_s17, 1 }
  0x29   : > { %s2817_s24 = scalar_select %p640_p13, %s2636_s16, 1 }
  0x2a   : > { %s2247_s27 = sshll.u32 %s2814_s18, 4 }
  0x2b   : > { %s636_s26 = scalar_lea.vmem %s3200_s0, %s2247_s27  ;;  %s2248_s29 = sshll.u32 %s2817_s24, 4 }
  0x2c   : > { %s644_s25 = scalar_lea.vmem %s3201_s2, %s2248_s29  ;;  %s2838_s19 = scalar_lea.vmem %s3202_s4, %s2248_s29 }
  0x2d   : > { %s2427_s2 = smul.u32 144, %s2817_s24  ;;  %s2250_s12 = sshll.u32 %s2817_s24, 5 }
  0x2e   : > { %s677_s4 = scalar_lea.vmem %s3156_s11, %s2817_s24  ;;  %s2870_s1 = scalar_lea.vmem %s3155_s10, %s2250_s12 }
  0x2f   : > { %s2865_s15 = scalar_lea.vmem %s3153_s8, %s2427_s2  ;;  %s3205_s0 = sld [smem:[#allocation26_spill]] }
  0x30   : > { %s683_s7 = scalar_lea.vmem %s3206_s9, %s2817_s24  ;;  %s3207_s29 = sld [smem:[#allocation10_spill]] }
  0x35   : > { %s680_s30 = scalar_lea.vmem %s3205_s0, %s2817_s24 }
  0x36   : > { %p2156_p0 = scmp.ne.s32.totalorder %s3207_s29, 0 }
  0x37   : > { %v689_v0 = vld [vmem:[%s636_s26] sm:$0xff] (!%p2156_p0)  ;;  %vm691_vm0 = vcmask (!%p2156_p0), 261120   ;;  %v690_v1 = vld [vmem:[%s636_s26 + $0x8] sm:$0xff] (!%p2156_p0) }
  0x38   : > { %688 = sbr.rel (%p2156_p0) target bundleno = 63 (0x3f), region = 80  ;;  %692 = vst.msk [vmem:[#allocation2] sm:$0xff] (!%p2156_p0), %vm691_vm0, %v689_v0  ;;  %693 = vst.msk [vmem:[#allocation2 + $0x8] sm:$0xff] (!%p2156_p0), %vm691_vm0, %v690_v1 }
  0x3f PF: > { %v2508_v2 = vld [vmem:[%s644_s25] sm:$0xff]   ;;  %v2654_v3 = vmov 0.0   ;;  %v2509_v4 = vld [vmem:[%s644_s25 + $0x8] sm:$0xff]   ;;  %vm2655_vm1 = vmmov 0   ;;  %v2887_v5 = vld [vmem:[#allocation2] sm:$0xff]  ;;  %vm731_vm2 = vcmask 261120   ;;  %s3208_s9 = scalar_lea.vmem %s3148_s3, %s2817_s24  ;;  %s3211_s27 = scalar_lea.vmem %s3150_s5, %s2817_s24 }
  0x40   : > { %2299 = vmatprep.subr.bf16.mxu1 %v2654_v3  ;;  %2313 = vmatprep.subr.bf16.mxu0 %v2654_v3  ;;  %v2889_v6 = vld [vmem:[#allocation2 + $0x8] sm:$0xff]  ;;  %1182 = vst.msk [vmem:[#allocation3] sm:$0xff] %vm731_vm2, %v2654_v3  ;;  %s2656_s16 = smov 96   ;;  %s2657_s23 = smov 112   ;;  %vm783_vm3 = vcmask 130048   ;;  %vm1183_vm4 = vcmask 257024  }
  0x41   : > { %2300 = vmatpush3.bf16.msra.mxu1 %v2508_v2  ;;  %2303 = vmatprep.mubr.msk.bf16.mxu1 %vm2655_vm1, %v2654_v3  ;;  %v707_v7 = vpack.c.bf16 %v2889_v6, %v2887_v5  ;;  %v2158_v8 = vld [vmem:[%s3208_s9] ss:$0 sm:$0xff]  ;;  %s2658_s25 = smov 80   ;;  %s3209_s12 = sld [smem:[#allocation21_spill]]  ;;  %v2511_v2 = vld [vmem:[%s2838_s19 + $0x8] sm:$0xff]   ;;  %vm1826_vm5 = vcmask 523264  }
  0x42   : > { %2301 = vmatprep.subr.bf16.mxu1 %v2654_v3  ;;  %2315 = vmatprep.mubr.msk.bf16.mxu0 %vm2655_vm1, %v2654_v3  ;;  %s2660_s28 = smov 64   ;;  %v2510_v1 = vld [vmem:[%s2838_s19] sm:$0xff]   ;;  %1184 = vst.msk [vmem:[#allocation3 + $0x18] sm:$0xf] %vm1183_vm4, %v2654_v3  ;;  %s3212_s29 = scalar_lea.vmem %s3151_s6, %s2817_s24 }
  0x43   : > { %s3213_s9 = sld [smem:[#allocation24_spill]] }
  0x45   : > { %2302 = vmatpush3.bf16.msra.mxu1 %v2509_v4 }
  0x46   : > { %2307 = vmatprep.subr.bf16.mxu1 %v2654_v3 }
  0x47   : > { %s3210_s22 = scalar_lea.vmem %s3209_s12, %s2814_s18  ;;  %s2659_s18 = smov 48  }
  0x48   : > { %2304 = vmatmul.mubr.msk.bf16.vlgmr.msra.gmra.mrb[0].mxu1 %vm731_vm2, %v707_v7  ;;  %v2157_v24 = vld [vmem:[%s3210_s22] ss:$0 sm:$0xff] }
  0x49   : > { %2309 = vmatprep.mubr.msk.bf16.mxu1 %vm2655_vm1, %v2654_v3 }
 0x11b   : > { %v769_v9 = vpop.f32.mrb[0].mxu1 }
 0x11c   : > { %v770_v10 = vadd.f32 %v2158_v8, %v769_v9  ;;  %v2305_v11 = vpop.f32.mrb[1].mxu1 }
 0x11d   : > { %v772_v12 = vpop.f32.mrb[2].mxu1 }
 0x11e   : > { %v773_v13 = vadd.f32 %v2158_v8, %v772_v12  ;;  %v2306_v14 = vpop.f32.mrb[3].mxu1  ;;  %v776_v15 = vmul.f32 0.25, %v770_v10 }
 0x120   : > { %v777_v16 = vmul.f32 0.25, %v773_v13  ;;  %v779_v17 = vpack.c.bf16 %v773_v13, %v770_v10 }
 0x122   : > { %781 = vrot.lane.b32.xlu0 %v779_v17, %s2656_s16  ;;  %v778_v18 = vpack.c.bf16 %v777_v16, %v776_v15  ;;  %s3214_s16 = scalar_lea.vmem %s3213_s9, %s2817_s24 }
 0x124   : > { %903 = vrot.lane.b32.xlu1 %v778_v18, %s2657_s23  ;;  %s3215_s23 = sld [smem:[#allocation25_spill]] }
 0x126   : > { %905 = vrot.lane.b32.xlu0 %v779_v17, %s2658_s25 }
 0x12a   : > { %s3216_s25 = scalar_lea.vmem %s3215_s23, %s2817_s24 }
 0x194   : > { %v782_v19 = vpop.permute.xlu0 %781 }
 0x195   : > { %v788_v20 = vsel %vm783_vm3, %v782_v19, 0 }
 0x196   : > { %2308 = vmatpush3.bf16.xpose.msra.mxu1 %v788_v20  ;;  %v904_v23 = vpop.permute.xlu1 %903 }
 0x197   : > { %2319 = vmatprep.subr.bf16.mxu1 %v2654_v3 }
 0x198   : > { %v906_v21 = vpop.permute.xlu0 %905 }
 0x199   : > { %v911_v22 = vsel %vm783_vm3, %v906_v21, 0 }
 0x19d   : > { %2310 = vmatmul.mubr.msk.bf16.vlgmr.msra.gmra.mrb[4].mxu1 %vm783_vm3, %v778_v18 }
 0x19e   : > { %2320 = vmatpush3.bf16.xpose.msra.mxu1 %v911_v22  ;;  %2321 = vmatprep.mubr.msk.bf16.mxu1 %vm2655_vm1, %v2654_v3 }
 0x19f   : > { %2331 = vmatprep.subr.bf16.mxu1 %v2654_v3 }
 0x1a5   : > { %2322 = vmatmul.mubr.msk.bf16.vlgmr.msra.gmra.mrb[8].mxu1 %vm783_vm3, %v904_v23 }
 0x1a6   : > { %2333 = vmatprep.mubr.msk.bf16.mxu1 %vm2655_vm1, %v2654_v3  ;;  %2332 = vmatpush3.bf16.msra.mxu1 %v2511_v2 }
 0x1a7   : > { %2343 = vmatprep.subr.bf16.mxu1 %v2654_v3 }
 0x270   : > { %v824_v25 = vpop.f32.mrb[4].mxu1 }
 0x271   : > { %v825_v26 = vadd.f32 %v2157_v24, %v824_v25  ;;  %v2311_v27 = vpop.f32.mrb[5].mxu1 }
 0x272   : > { %v827_v28 = vpop.f32.mrb[6].mxu1 }
 0x273   : > { %v828_v29 = vadd.f32 %v2157_v24, %v827_v28  ;;  %v2312_v30 = vpop.f32.mrb[7].mxu1  ;;  %v831_v31 = vsel %vm783_vm3, %v825_v26, -inf }
 0x274   : > { %832 = vmax.xlane.f32.xlu1 %v831_v31 }
 0x275   : > { %v834_v32 = vsel %vm783_vm3, %v828_v29, -inf }
 0x276   : > { %835 = vmax.xlane.f32.xlu0 %v834_v32 }
 0x278   : > { %v947_v33 = vpop.f32.mrb[8].mxu1 }
 0x279   : > { %v948_v34 = vadd.f32 %v2157_v24, %v947_v33  ;;  %v2323_v35 = vpop.f32.mrb[9].mxu1  ;;  %v2170_v33 = vld [vmem:[%s3211_s27] ss:$0 sm:$0xff] }
 0x27a   : > { %v950_v36 = vpop.f32.mrb[10].mxu1 }
 0x27b   : > { %v951_v37 = vadd.f32 %v2157_v24, %v950_v36  ;;  %v2324_v38 = vpop.f32.mrb[11].mxu1  ;;  %v954_v39 = vsel %vm783_vm3, %v948_v34, -inf }
 0x27c   : > { %955 = vmax.xlane.f32.xlu0 %v954_v39 }
 0x27d   : > { %v957_v40 = vsel %vm783_vm3, %v951_v37, -inf }
 0x27e   : > { %958 = vmax.xlane.f32.xlu1 %v957_v40 }
 0x28f   : > { %975 = vrot.lane.b32.xlu1 %v779_v17, %s2659_s18 }
 0x292   : > { %852 = vrot.lane.b32.xlu0 %v779_v17, %s2660_s28 }
 0x301   : > { %v833_v41 = vpop.xlane.xlu1 %832 }
 0x302   : > { %v837_v42 = vsub.f32 %v825_v26, %v833_v41 }
 0x303   : > { %v836_v43 = vpop.xlane.xlu0 %835 }
 0x304   : > { %v839_v44 = vmul.f32 1.442695, %v837_v42  ;;  %v838_v45 = vsub.f32 %v828_v29, %v836_v43 }
 0x306   : > { %2534 = vpow2.f32 %v839_v44  ;;  %v841_v46 = vmul.f32 1.442695, %v838_v45 }
 0x308   : > { %2536 = vpow2.f32 %v841_v46 }
 0x309   : > { %v956_v47 = vpop.xlane.xlu0 %955 }
 0x30a   : > { %v960_v48 = vsub.f32 %v948_v34, %v956_v47 }
 0x30b   : > { %v959_v49 = vpop.xlane.xlu1 %958 }
 0x30c   : > { %v962_v50 = vmul.f32 1.442695, %v960_v48  ;;  %v961_v51 = vsub.f32 %v951_v37, %v959_v49 }
 0x30d   : > { %v853_v52 = vpop.permute.xlu0 %852 }
 0x30e   : > { %2538 = vpow2.f32 %v962_v50  ;;  %v964_v53 = vmul.f32 1.442695, %v961_v51  ;;  %2314 = vmatpush3.bf16.msra.mxu0 %v853_v52 }
 0x30f   : > { %2325 = vmatprep.subr.bf16.mxu0 %v2654_v3  ;;  %v976_v59 = vpop.permute.xlu1 %975 }
 0x310   : > { %v2535_v54 = vpop.eup %2534  ;;  %2540 = vpow2.f32 %v964_v53  ;;  %v2512_v53 = vld [vmem:[%s2865_s15 + $0x10] sm:$0xff]  }
 0x311   : > { %v843_v55 = vsel %vm783_vm3, %v2535_v54, 0.0 }
 0x312   : > { %v2537_v56 = vpop.eup %2536  ;;  %844 = vadd.xlane.f32.xlu1 %v843_v55  ;;  %v2514_v55 = vld [vmem:[%s2865_s15 + $0x18] sm:$0xff]  }
 0x313   : > { %v846_v57 = vsel %vm783_vm3, %v2537_v56, 0.0  ;;  %v851_v58 = vpack.c.bf16 %v2537_v56, %v2535_v54  ;;  %v2513_v54 = vld [vmem:[%s2865_s15] sm:$0xff]   ;;  %v2515_v56 = vld [vmem:[%s2865_s15 + $0x8] sm:$0xff]  }
 0x314   : > { %847 = vadd.xlane.f32.xlu0 %v846_v57 }
 0x315   : > { %2316 = vmatmul.mubr.msk.bf16.vlgmr.msra.gmra.mrb[0].mxu0 %vm783_vm3, %v851_v58 }
 0x316   : > { %2326 = vmatpush3.bf16.msra.mxu0 %v976_v59  ;;  %2327 = vmatprep.mubr.msk.bf16.mxu0 %vm2655_vm1, %v2654_v3 }
 0x317   : > { %2337 = vmatprep.subr.bf16.mxu0 %v2654_v3 }
 0x318   : > { %v2539_v60 = vpop.eup %2538 }
 0x319   : > { %v966_v61 = vsel %vm783_vm3, %v2539_v60, 0.0 }
 0x31a   : > { %v2541_v62 = vpop.eup %2540  ;;  %967 = vadd.xlane.f32.xlu0 %v966_v61 }
 0x31b   : > { %v969_v63 = vsel %vm783_vm3, %v2541_v62, 0.0  ;;  %v974_v0 = vpack.c.bf16 %v2541_v62, %v2539_v60 }
 0x31c   : > { %970 = vadd.xlane.f32.xlu1 %v969_v63 }
 0x31d   : > { %2328 = vmatmul.mubr.msk.bf16.vlgmr.msra.gmra.mrb[4].mxu0 %vm783_vm3, %v974_v0  ;;  %v2171_v0 = vld [vmem:[%s3212_s29] ss:$0 sm:$0xff] }
 0x31e   : > { %2339 = vmatprep.mubr.msk.bf16.mxu0 %vm2655_vm1, %v2654_v3  ;;  %2338 = vmatpush3.bf16.msra.mxu0 %v2510_v1 }
 0x31f   : > { %2351 = vmatprep.subr.bf16.mxu0 %v2654_v3 }
 0x39f   : > { %v845_v4 = vpop.xlane.xlu1 %844 }
 0x3a0   : > { %2542 = vrcp.f32 %v845_v4  ;;  %v2172_v4 = vld [vmem:[%s3214_s16] ss:$0 sm:$0xff] }
 0x3a1   : > { %v848_v7 = vpop.xlane.xlu0 %847 }
 0x3a2   : > { %2544 = vrcp.f32 %v848_v7 }
 0x3a7   : > { %v968_v8 = vpop.xlane.xlu0 %967 }
 0x3a8   : > { %2546 = vrcp.f32 %v968_v8 }
 0x3a9   : > { %v971_v9 = vpop.xlane.xlu1 %970 }
 0x3aa   : > { %2548 = vrcp.f32 %v971_v9  ;;  %v2543_v11 = vpop.eup %2542 }
 0x3ac   : > { %v2545_v13 = vpop.eup %2544 }
 0x3b2   : > { %v2547_v20 = vpop.eup %2546 }
 0x3b4   : > { %v2549_v22 = vpop.eup %2548 }
 0x3e8   : > { %v892_v10 = vpop.f32.mrb[0].mxu0 }
 0x3e9   : > { %v2317_v12 = vpop.f32.mrb[1].mxu0  ;;  %v899_v15 = vmul.f32 %v2543_v11, %v892_v10 }
 0x3ea   : > { %v895_v14 = vpop.f32.mrb[2].mxu0 }
 0x3eb   : > { %v900_v16 = vmul.f32 %v2545_v13, %v895_v14  ;;  %v2318_v17 = vpop.f32.mrb[3].mxu0 }
 0x3ed   : > { %v901_v18 = vpack.c.bf16 %v900_v16, %v899_v15  ;;  %v2516_v15 = vld [vmem:[%s2865_s15 + $0x20] sm:$0xff]   ;;  %v2517_v16 = vld [vmem:[%s2865_s15 + $0x30] sm:$0xff]  }
 0x3ef   : > { %2340 = vmatmul.mubr.msk.bf16.vlgmr.msra.gmra.mrb[8].mxu0 %vm783_vm3, %v901_v18 }
 0x3f0   : > { %v1015_v19 = vpop.f32.mrb[4].mxu0  ;;  %2355 = vmatprep.mubr.msk.bf16.mxu0 %vm2655_vm1, %v2654_v3  ;;  %2352 = vmatpush3.bf16.msra.mxu0 %v2513_v54  ;;  %v2532_v54 = vld [vmem:[%s2870_s1 + $0x10] sm:$0xff]  }
 0x3f1   : > { %v2329_v21 = vpop.f32.mrb[5].mxu0  ;;  %v1022_v24 = vmul.f32 %v2547_v20, %v1015_v19  ;;  %2353 = vmatprep.subr.bf16.mxu0 %v2654_v3 }
 0x3f2   : > { %v1018_v23 = vpop.f32.mrb[6].mxu0  ;;  %v2519_v21 = vld [vmem:[%s2865_s15 + $0x38] sm:$0xff]  }
 0x3f3   : > { %v1023_v25 = vmul.f32 %v2549_v22, %v1018_v23  ;;  %v2330_v26 = vpop.f32.mrb[7].mxu0 }
 0x3f4   : > { %2354 = vmatpush3.bf16.msra.mxu0 %v2515_v56 }
 0x3f5   : > { %v1024_v27 = vpack.c.bf16 %v1023_v25, %v1022_v24  ;;  %2367 = vmatprep.subr.bf16.mxu0 %v2654_v3  ;;  %v2520_v24 = vld [vmem:[%s2865_s15 + $0x40] sm:$0xff]  }
 0x3f7   : > { %2334 = vmatmul.mubr.msk.bf16.vlgmr.msra.gmra.mrb[12].mxu1 %vm783_vm3, %v1024_v27  ;;  %v2521_v27 = vld [vmem:[%s2865_s15 + $0x50] sm:$0xff]  }
 0x3f8   : > { %2347 = vmatprep.mubr.msk.bf16.mxu1 %vm2655_vm1, %v2654_v3  ;;  %2344 = vmatpush3.bf16.msra.mxu1 %v2512_v53  ;;  %v2531_v53 = vld [vmem:[%s2870_s1 + $0x8] sm:$0xff]  }
 0x3f9   : > { %2345 = vmatprep.subr.bf16.mxu1 %v2654_v3 }
 0x3fc   : > { %2346 = vmatpush3.bf16.msra.mxu1 %v2514_v55  ;;  %v2533_v55 = vld [vmem:[%s2870_s1 + $0x18] sm:$0xff]  }
 0x3fd   : > { %2359 = vmatprep.subr.bf16.mxu1 %v2654_v3 }
 0x4c2   : > { %v1118_v28 = vpop.f32.mrb[8].mxu0 }
 0x4c3   : > { %v2341_v29 = vpop.f32.mrb[9].mxu0 }
 0x4c4   : > { %v1121_v30 = vpop.f32.mrb[10].mxu0 }
 0x4c5   : > { %v2342_v31 = vpop.f32.mrb[11].mxu0 }
 0x4c6   : > { %v2523_v31 = vld [vmem:[%s2865_s15 + $0x58] sm:$0xff]  }
 0x4ca   : > { %v1068_v32 = vpop.f32.mrb[12].mxu1 }
 0x4cb   : > { %v1119_v34 = vadd.f32 %v1118_v28, %v1068_v32  ;;  %v2335_v35 = vpop.f32.mrb[13].mxu1 }
 0x4cc   : > { %v1071_v36 = vpop.f32.mrb[14].mxu1 }
 0x4cd   : > { %v1122_v37 = vadd.f32 %v1121_v30, %v1071_v36  ;;  %v2336_v38 = vpop.f32.mrb[15].mxu1  ;;  %v1132_v39 = vadd.f32 %v2170_v33, %v1119_v34  ;;  %v2522_v30 = vld [vmem:[%s2865_s15 + $0x48] sm:$0xff]   ;;  %v2524_v36 = vld [vmem:[%s2865_s15 + $0x60] sm:$0xff]  }
 0x4cf   : > { %v1136_v40 = vsel %vm731_vm2, %v1132_v39, 0.0  ;;  %v1133_v41 = vadd.f32 %v2170_v33, %v1122_v37  ;;  %v2525_v37 = vld [vmem:[%s2865_s15 + $0x70] sm:$0xff]  }
 0x4d0   : > { %1137 = vadd.xlane.f32.xlu0 %v1136_v40  ;;  %v2526_v40 = vld [vmem:[%s2865_s15 + $0x68] sm:$0xff]  }
 0x4d1   : > { %v1139_v42 = vsel %vm731_vm2, %v1133_v41, 0.0 }
 0x4d2   : > { %1140 = vadd.xlane.f32.xlu1 %v1139_v42 }
 0x55d   : > { %v1138_v43 = vpop.xlane.xlu0 %1137 }
 0x55e   : > { %v1143_v44 = vmul.f32 0.03125, %v1138_v43 }
 0x55f   : > { %v1141_v45 = vpop.xlane.xlu1 %1140 }
 0x560   : > { %v1145_v46 = vsub.f32 %v1132_v39, %v1143_v44  ;;  %v1144_v47 = vmul.f32 0.03125, %v1141_v45 }
 0x562   : > { %v1146_v48 = vsub.f32 %v1133_v41, %v1144_v47  ;;  %v1147_v49 = vmul.f32 %v1145_v46, %v1145_v46  ;;  %v2527_v41 = vld [vmem:[%s2865_s15 + $0x78] sm:$0xff]  }
 0x564   : > { %v1149_v50 = vsel %vm731_vm2, %v1147_v49, 0.0  ;;  %v1148_v51 = vmul.f32 %v1146_v48, %v1146_v48  ;;  %v2529_v49 = vld [vmem:[%s2865_s15 + $0x88] sm:$0xff]  }
 0x565   : > { %1150 = vadd.xlane.f32.xlu0 %v1149_v50 }
 0x566   : > { %v1152_v52 = vsel %vm731_vm2, %v1148_v51, 0.0 }
 0x567   : > { %1153 = vadd.xlane.f32.xlu1 %v1152_v52  ;;  %v2530_v52 = vld [vmem:[%s2870_s1] sm:$0xff]  }
 0x5f2   : > { %v1151_v57 = vpop.xlane.xlu0 %1150 }
 0x5f3   : > { %v1155_v58 = vmul.f32 0.03125, %v1151_v57 }
 0x5f4   : > { %v1154_v59 = vpop.xlane.xlu1 %1153 }
 0x5f5   : > { %v1157_v60 = vadd.f32 1e-05, %v1155_v58  ;;  %v1156_v61 = vmul.f32 0.03125, %v1154_v59 }
 0x5f7   : > { %2550 = vrsqrt.f32 %v1157_v60  ;;  %v1158_v62 = vadd.f32 1e-05, %v1156_v61 }
 0x5f9   : > { %2552 = vrsqrt.f32 %v1158_v62 }
 0x601   : > { %v2551_v63 = vpop.eup %2550 }
 0x602   : > { %v1161_v1 = vmul.f32 %v2551_v63, %v1145_v46  ;;  %v2528_v46 = vld [vmem:[%s2865_s15 + $0x80] sm:$0xff]  }
 0x603   : > { %v2553_v2 = vpop.eup %2552 }
 0x604   : > { %v1169_v7 = vmul.f32 %v2171_v0, %v1161_v1  ;;  %v1162_v8 = vmul.f32 %v2553_v2, %v1146_v48 }
 0x606   : > { %v1177_v9 = vadd.f32 %v2172_v4, %v1169_v7  ;;  %v1170_v10 = vmul.f32 %v2171_v0, %v1162_v8 }
 0x608   : > { %v2977_v11 = vadd.f32 %v1177_v9, %v2887_v5  ;;  %v1178_v12 = vadd.f32 %v2172_v4, %v1170_v10 }
 0x60a   : > { %1185 = vst.msk [vmem:[#allocation3 + $0x8] sm:$0xff] %vm731_vm2, %v2977_v11  ;;  %v2982_v13 = vadd.f32 %v1178_v12, %v2889_v6  ;;  %v2518_v6 = vld [vmem:[%s2865_s15 + $0x28] sm:$0xff]  }
 0x60c   : > { %1186 = vst.msk [vmem:[#allocation3 + $0x10] sm:$0xff] %vm731_vm2, %v2982_v13 }
 0x611   : > { %v1194_v14 = vld [vmem:[#allocation3 + $0x5] sm:$0xff] }
 0x612   : > { %v1187_v18 = vld [vmem:[#allocation3 + $0x4] sm:$0xff] }
 0x613   : > { %v1195_v17 = vld [vmem:[#allocation3 + $0xd] sm:$0xff] }
 0x614   : > { %v2988_v5 = vld [vmem:[#allocation3 + $0xc] sm:$0xff]  ;;  %v1196_v19 = vpack.c.bf16 %v1195_v17, %v1194_v14  ;;  %v1711_v50 = vld [vmem:[#allocation3 + $0x14] sm:$0xff] }
 0x615   : > { %v1189_v20 = vpack.c.bf16 %v2988_v5, %v1187_v18  ;;  %v1315_v22 = vld [vmem:[#allocation3 + $0xe] sm:$0xff]  ;;  %v1314_v25 = vld [vmem:[#allocation3 + $0x6] sm:$0xff]  ;;  %v1712_v51 = vpack.c.bf16 %v1711_v50, %v2988_v5 }
 0x616   : > { %2348 = vmatmul.mubr.msk.bf16.vlgmr.msra.gmra.mrb[16].mxu1 %vm731_vm2, %v1196_v19  ;;  %v1381_v23 = vld [vmem:[#allocation3 + $0xf] sm:$0xff]  ;;  %v1380_v26 = vld [vmem:[#allocation3 + $0x7] sm:$0xff]  ;;  %v1316_v28 = vpack.c.bf16 %v1315_v22, %v1314_v25 }
 0x617   : > { %2356 = vmatmul.mubr.msk.bf16.vlgmr.msra.gmra.mrb[12].mxu0 %vm731_vm2, %v1189_v20  ;;  %2360 = vmatpush3.bf16.msra.mxu1 %v2516_v15  ;;  %v1382_v29 = vpack.c.bf16 %v1381_v23, %v1380_v26  ;;  %v1447_v32 = vld [vmem:[#allocation3 + $0x10] sm:$0xff]  ;;  %v1446_v35 = vld [vmem:[#allocation3 + $0x8] sm:$0xff] }
 0x618   : > { %2368 = vmatpush3.bf16.msra.mxu0 %v2517_v16  ;;  %2361 = vmatprep.subr.bf16.mxu1 %v2654_v3  ;;  %v1512_v33 = vld [vmem:[#allocation3 + $0x9] sm:$0xff]  ;;  %v1513_v34 = vld [vmem:[#allocation3 + $0x11] sm:$0xff]  ;;  %v1448_v38 = vpack.c.bf16 %v1447_v32, %v1446_v35 }
 0x619   : > { %2369 = vmatprep.subr.bf16.mxu0 %v2654_v3  ;;  %2363 = vmatprep.mubr.msk.bf16.mxu1 %vm2655_vm1, %v2654_v3  ;;  %v1514_v39 = vpack.c.bf16 %v1513_v34, %v1512_v33  ;;  %v1578_v42 = vld [vmem:[#allocation3 + $0xa] sm:$0xff]  ;;  %v1579_v43 = vld [vmem:[#allocation3 + $0x12] sm:$0xff] }
 0x61a   : > { %2371 = vmatprep.mubr.msk.bf16.mxu0 %vm2655_vm1, %v2654_v3  ;;  %v1644_v44 = vld [vmem:[#allocation3 + $0xb] sm:$0xff]  ;;  %v1645_v45 = vld [vmem:[#allocation3 + $0x13] sm:$0xff]  ;;  %v1580_v47 = vpack.c.bf16 %v1579_v43, %v1578_v42 }
 0x61b   : > { %2362 = vmatpush3.bf16.msra.mxu1 %v2518_v6  ;;  %v1646_v48 = vpack.c.bf16 %v1645_v45, %v1644_v44 }
 0x61c   : > { %2370 = vmatpush3.bf16.msra.mxu0 %v2519_v21  ;;  %2375 = vmatprep.subr.bf16.mxu1 %v2654_v3 }
 0x61d   : > { %2383 = vmatprep.subr.bf16.mxu0 %v2654_v3 }
 0x61e   : > { %2364 = vmatmul.mubr.msk.bf16.vlgmr.msra.gmra.mrb[20].mxu1 %vm731_vm2, %v1316_v28 }
 0x61f   : > { %2372 = vmatmul.mubr.msk.bf16.vlgmr.msra.gmra.mrb[16].mxu0 %vm731_vm2, %v1382_v29  ;;  %2376 = vmatpush3.bf16.msra.mxu1 %v2520_v24 }
 0x620   : > { %2384 = vmatpush3.bf16.msra.mxu0 %v2521_v27  ;;  %2377 = vmatprep.subr.bf16.mxu1 %v2654_v3 }
 0x621   : > { %2385 = vmatprep.subr.bf16.mxu0 %v2654_v3  ;;  %2379 = vmatprep.mubr.msk.bf16.mxu1 %vm2655_vm1, %v2654_v3 }
 0x622   : > { %2387 = vmatprep.mubr.msk.bf16.mxu0 %vm2655_vm1, %v2654_v3 }
 0x623   : > { %2378 = vmatpush3.bf16.msra.mxu1 %v2522_v30 }
 0x624   : > { %2386 = vmatpush3.bf16.msra.mxu0 %v2523_v31  ;;  %2391 = vmatprep.subr.bf16.mxu1 %v2654_v3 }
 0x625   : > { %2399 = vmatprep.subr.bf16.mxu0 %v2654_v3 }
 0x626   : > { %2380 = vmatmul.mubr.msk.bf16.vlgmr.msra.gmra.mrb[24].mxu1 %vm731_vm2, %v1448_v38 }
 0x627   : > { %2388 = vmatmul.mubr.msk.bf16.vlgmr.msra.gmra.mrb[20].mxu0 %vm731_vm2, %v1514_v39  ;;  %2392 = vmatpush3.bf16.msra.mxu1 %v2524_v36 }
 0x628   : > { %2400 = vmatpush3.bf16.msra.mxu0 %v2525_v37  ;;  %2393 = vmatprep.subr.bf16.mxu1 %v2654_v3 }
 0x629   : > { %2401 = vmatprep.subr.bf16.mxu0 %v2654_v3  ;;  %2395 = vmatprep.mubr.msk.bf16.mxu1 %vm2655_vm1, %v2654_v3 }
 0x62a   : > { %2403 = vmatprep.mubr.msk.bf16.mxu0 %vm2655_vm1, %v2654_v3 }
 0x62b   : > { %2394 = vmatpush3.bf16.msra.mxu1 %v2526_v40  ;;  %v2232_v40 = vld [vmem:[%s3216_s25] ss:$0 sm:$0xff] }
 0x62c   : > { %2402 = vmatpush3.bf16.msra.mxu0 %v2527_v41  ;;  %2407 = vmatprep.subr.bf16.mxu1 %v2654_v3 }
 0x62d   : > { %2415 = vmatprep.subr.bf16.mxu0 %v2654_v3 }
 0x62e   : > { %2396 = vmatmul.mubr.msk.bf16.vlgmr.msra.gmra.mrb[28].mxu1 %vm731_vm2, %v1580_v47 }
 0x62f   : > { %2404 = vmatmul.mubr.msk.bf16.vlgmr.msra.gmra.mrb[24].mxu0 %vm731_vm2, %v1646_v48  ;;  %2408 = vmatpush3.bf16.msra.mxu1 %v2528_v46 }
 0x630   : > { %2411 = vmatprep.mubr.msk.bf16.mxu1 %vm2655_vm1, %v2654_v3  ;;  %2409 = vmatprep.subr.bf16.mxu1 %v2654_v3 }
 0x631   : > { %2423 = vmatprep.mubr.msk.bf16.mxu0 %vm2655_vm1, %v2654_v3  ;;  %2416 = vmatpush3.bf16.msra.mxu0 %v2530_v52  ;;  %v2233_v52 = vld [vmem:[%s677_s4] ss:$0 sm:$0xff] }
 0x632   : > { %2417 = vmatprep.subr.bf16.mxu0 %v2654_v3 }
 0x633   : > { %2410 = vmatpush3.bf16.msra.mxu1 %v2529_v49 }
 0x635   : > { %2418 = vmatpush3.bf16.msra.mxu0 %v2531_v53 }
 0x636   : > { %2412 = vmatmul.mubr.msk.bf16.vlgmr.msra.gmra.mrb[32].mxu1 %vm731_vm2, %v1712_v51  ;;  %2419 = vmatprep.subr.bf16.mxu0 %v2654_v3 }
 0x639   : > { %2420 = vmatpush3.bf16.msra.mxu0 %v2532_v54 }
 0x63a   : > { %2421 = vmatprep.subr.bf16.mxu0 %v2654_v3 }
 0x63d   : > { %2422 = vmatpush3.bf16.msra.mxu0 %v2533_v55 }
 0x6e9   : > { %v1251_v56 = vpop.f32.mrb[16].mxu1 }
 0x6ea   : > { %v1307_v57 = vpop.f32.mrb[12].mxu0  ;;  %v2349_v59 = vpop.f32.mrb[17].mxu1 }
 0x6eb   : > { %v1308_v58 = vadd.f32 %v1307_v57, %v1251_v56  ;;  %v2357_v60 = vpop.f32.mrb[13].mxu0  ;;  %v1254_v61 = vpop.f32.mrb[18].mxu1 }
 0x6ec   : > { %v1310_v62 = vpop.f32.mrb[14].mxu0  ;;  %v2350_v0 = vpop.f32.mrb[19].mxu1 }
 0x6ed   : > { %v1311_v63 = vadd.f32 %v1310_v62, %v1254_v61  ;;  %v2358_v1 = vpop.f32.mrb[15].mxu0 }
 0x6f1   : > { %v1371_v2 = vpop.f32.mrb[20].mxu1 }
 0x6f2   : > { %v1437_v4 = vpop.f32.mrb[16].mxu0  ;;  %v1378_v7 = vadd.f32 %v1371_v2, %v1308_v58  ;;  %v2365_v8 = vpop.f32.mrb[21].mxu1 }
 0x6f3   : > { %v2373_v9 = vpop.f32.mrb[17].mxu0  ;;  %v1374_v10 = vpop.f32.mrb[22].mxu1 }
 0x6f4   : > { %v1440_v12 = vpop.f32.mrb[18].mxu0  ;;  %v1444_v3 = vadd.f32 %v1437_v4, %v1378_v7  ;;  %v1379_v14 = vadd.f32 %v1374_v10, %v1311_v63  ;;  %v2366_v15 = vpop.f32.mrb[23].mxu1 }
 0x6f5   : > { %v2374_v16 = vpop.f32.mrb[19].mxu0 }
 0x6f6   : > { %v1445_v17 = vadd.f32 %v1440_v12, %v1379_v14 }
 0x6f9   : > { %v1503_v18 = vpop.f32.mrb[24].mxu1 }
 0x6fa   : > { %v1569_v5 = vpop.f32.mrb[20].mxu0  ;;  %v1510_v19 = vadd.f32 %v1503_v18, %v1444_v3  ;;  %v2381_v20 = vpop.f32.mrb[25].mxu1  ;;  %v2239_v18 = vld [vmem:[%s680_s30] ss:$0 sm:$0xff]  ;;  %s3219_s30 = sld [smem:[#allocation10_spill]] }
 0x6fb   : > { %v2389_v6 = vpop.f32.mrb[21].mxu0  ;;  %v1506_v21 = vpop.f32.mrb[26].mxu1  ;;  %v2240_v20 = vld [vmem:[%s683_s7] ss:$0 sm:$0xff] }
 0x6fc   : > { %v1572_v22 = vpop.f32.mrb[22].mxu0  ;;  %v1576_v23 = vadd.f32 %v1569_v5, %v1510_v19  ;;  %v1511_v24 = vadd.f32 %v1506_v21, %v1445_v17  ;;  %v2382_v25 = vpop.f32.mrb[27].mxu1 }
 0x6fd   : > { %v2390_v26 = vpop.f32.mrb[23].mxu0 }
 0x6fe   : > { %v1577_v27 = vadd.f32 %v1572_v22, %v1511_v24 }
 0x700   : > { %p2241_p1 = scmp.ne.s32.totalorder %s3219_s30, 1 }
 0x701   : > { %v1635_v28 = vpop.f32.mrb[28].mxu1 }
 0x702   : > { %v1701_v29 = vpop.f32.mrb[24].mxu0  ;;  %v1642_v30 = vadd.f32 %v1635_v28, %v1576_v23  ;;  %v2397_v31 = vpop.f32.mrb[29].mxu1 }
 0x703   : > { %v2405_v32 = vpop.f32.mrb[25].mxu0  ;;  %v1638_v33 = vpop.f32.mrb[30].mxu1 }
 0x704   : > { %v1704_v34 = vpop.f32.mrb[26].mxu0  ;;  %v1708_v35 = vadd.f32 %v1701_v29, %v1642_v30  ;;  %v1643_v36 = vadd.f32 %v1638_v33, %v1577_v27  ;;  %v2398_v37 = vpop.f32.mrb[31].mxu1 }
 0x705   : > { %v2406_v38 = vpop.f32.mrb[27].mxu0 }
 0x706   : > { %v1709_v39 = vadd.f32 %v1704_v34, %v1643_v36 }
 0x709   : > { %v1767_v41 = vpop.f32.mrb[32].mxu1 }
 0x70a   : > { %v1774_v42 = vadd.f32 %v1767_v41, %v1708_v35  ;;  %v2413_v43 = vpop.f32.mrb[33].mxu1 }
 0x70b   : > { %v1770_v44 = vpop.f32.mrb[34].mxu1 }
 0x70c   : > { %v1782_v45 = vadd.f32 %v2232_v40, %v1774_v42  ;;  %v1775_v46 = vadd.f32 %v1770_v44, %v1709_v39  ;;  %v2414_v47 = vpop.f32.mrb[35].mxu1 }
 0x70e   : > { %v1783_v48 = vadd.f32 %v2232_v40, %v1775_v46  ;;  %v1784_v49 = vmax.f32 %v1782_v45, 0.0 }
 0x710   : > { %v1785_v50 = vmax.f32 %v1783_v48, 0.0 }
 0x712   : > { %v1787_v51 = vpack.c.bf16 %v1785_v50, %v1784_v49 }
 0x714   : > { %2424 = vmatmul.mubr.msk.bf16.vlgmr.msra.gmra.mrb[28].mxu0 %vm1826_vm5, %v1787_v51 }
 0x7e7   : > { %v1864_v53 = vpop.f32.mrb[28].mxu0 }
 0x7e8   : > { %v1865_v54 = vadd.f32 %v2233_v52, %v1864_v53  ;;  %v2425_v55 = vpop.f32.mrb[29].mxu0 }
 0x7e9   : > { %v1867_v56 = vpop.f32.mrb[30].mxu0 }
 0x7ea   : > { %v1868_v57 = vadd.f32 %v2233_v52, %v1867_v56  ;;  %v2426_v58 = vpop.f32.mrb[31].mxu0  ;;  %v1873_v59 = vsel %vm731_vm2, %v1865_v54, 0.0 }
 0x7eb   : > { %1874 = vadd.xlane.f32.xlu0 %v1873_v59 }
 0x7ec   : > { %v1876_v60 = vsel %vm731_vm2, %v1868_v57, 0.0 }
 0x7ed   : > { %1877 = vadd.xlane.f32.xlu1 %v1876_v60 }
 0x878   : > { %v1875_v61 = vpop.xlane.xlu0 %1874 }
 0x879   : > { %v1879_v62 = vmul.f32 0.03125, %v1875_v61 }
 0x87a   : > { %v1878_v63 = vpop.xlane.xlu1 %1877 }
 0x87b   : > { %v1881_v0 = vsub.f32 %v1865_v54, %v1879_v62  ;;  %v1880_v1 = vmul.f32 0.03125, %v1878_v63 }
 0x87d   : > { %v1882_v2 = vsub.f32 %v1868_v57, %v1880_v1  ;;  %v1883_v4 = vmul.f32 %v1881_v0, %v1881_v0 }
 0x87f   : > { %v1885_v7 = vsel %vm731_vm2, %v1883_v4, 0.0  ;;  %v1884_v8 = vmul.f32 %v1882_v2, %v1882_v2 }
 0x880   : > { %1886 = vadd.xlane.f32.xlu0 %v1885_v7 }
 0x881   : > { %v1888_v9 = vsel %vm731_vm2, %v1884_v8, 0.0 }
 0x882   : > { %1889 = vadd.xlane.f32.xlu1 %v1888_v9 }
 0x90d   : > { %v1887_v10 = vpop.xlane.xlu0 %1886 }
 0x90e   : > { %v1891_v12 = vmul.f32 0.03125, %v1887_v10 }
 0x90f   : > { %v1890_v3 = vpop.xlane.xlu1 %1889 }
 0x910   : > { %v1893_v14 = vadd.f32 1e-05, %v1891_v12  ;;  %v1892_v15 = vmul.f32 0.03125, %v1890_v3 }
 0x912   : > { %2554 = vrsqrt.f32 %v1893_v14  ;;  %v1894_v16 = vadd.f32 1e-05, %v1892_v15 }
 0x914   : > { %2556 = vrsqrt.f32 %v1894_v16 }
 0x91c   : > { %v2555_v17 = vpop.eup %2554 }
 0x91d   : > { %v1897_v5 = vmul.f32 %v2555_v17, %v1881_v0 }
 0x91e   : > { %v2557_v19 = vpop.eup %2556 }
 0x91f   : > { %v1905_v6 = vmul.f32 %v2239_v18, %v1897_v5  ;;  %v1898_v21 = vmul.f32 %v2557_v19, %v1882_v2 }
 0x921   : > { %v1913_v22 = vadd.f32 %v2240_v20, %v1905_v6  ;;  %v1906_v23 = vmul.f32 %v2239_v18, %v1898_v21  ;;  %1922 = sbr.rel (%p2241_p1) target bundleno = 2344 (0x928), region = 84 }
 0x923   : > { %v1915_v24 = vadd.f32 %v1913_v22, %v2977_v11  ;;  %v1914_v25 = vadd.f32 %v2240_v20, %v1906_v23 }
 0x925   : > { %1917 = vst.msk [vmem:[#allocation2] sm:$0xff] %vm731_vm2, %v1915_v24  ;;  %v1916_v26 = vadd.f32 %v1914_v25, %v2982_v13  ;;  %1923 = vst.msk [vmem:[%s2880_s13] sm:$0xff] (!%p2241_p1), %vm731_vm2, %v1915_v24 }
 0x927   : > { %1918 = vst.msk [vmem:[#allocation2 + $0x8] sm:$0xff] %vm731_vm2, %v1916_v26  ;;  %1924 = vst.msk [vmem:[%s2880_s13 + $0x8] sm:$0xff] (!%p2241_p1), %vm731_vm2, %v1916_v26 }
 0x928 PF: > { %s3220_s7 = sld [smem:[#allocation11_spill]]  ;;  %s3221_s24 = sld [smem:[#allocation8_spill]] }
 0x929   : > { %s3223_s29 = sld [smem:[#allocation28_spill]]  ;;  %s1939_s9 = sshll.u32 %s2880_s13, 4  ;;  %s3089_s9 = int_to_ptr.vmem [resolvable:$true] %s1939_s9 }
 0x92a   : > { %s2558_s1 = scalar_lea.vmem %s3089_s9, 256  ;;  %s2661_s23 = smov [#allocation4]  }
 0x92b   : > { %p2559_p2 = scmp.ne.s32.totalorder %s3089_s9, %s2558_s1  ;;  %s2562_s25 = sshll.u32 %s2661_s23, 4  ;;  %s2563_s25 = int_to_ptr.vmem [resolvable:$false] %s2562_s25 }
 0x92c   : > { %s2564_s26 = scalar_lea.vmem %s2563_s25, 512  ;;  %p2565_p6 = scmp.lt.s32.totalorder %s3089_s9, %s2563_s25 }
 0x92d   : > { %p2560_p4 = pnand %p2559_p2, %p2788_p3  ;;  %p2566_p7 = scmp.lt.s32.totalorder %s2564_s26, %s2558_s1 }
 0x92e   : > { %s2251_s27 = sshll.u32 %s3220_s7, 8  ;;  %s3225_s16 = sand.u32 1, %s3221_s24  }
 0x92f   : > { %s3224_s0 = smov %s3223_s29  ;;  %s3086_s2 = scalar_lea.hbm %s3223_s29, %s2251_s27 }
 0x930   : > { %s3093_s15 = scalar_lea.sflag [#allocation5], %s3225_s16  ;;  %p2561_p5 = pneg %p2560_p4 }
 0x931   : > { %p2567_p8 = por %p2566_p7, %p2565_p6 }
 0x933   : > { %p2568_p10 = pnand %p2567_p8, %p2561_p5 }
 0x935   : > { %2571 = shalt.err (!%p2568_p10)
}
 0x936   : > { %s2572_s13 = scalar_lea.hbm %s3086_s2, 256  ;;  %s2576_s12 = scalar_lea.hbm %s3224_s0, 512 }
 0x937   : > { %p2573_p11 = scmp.ne.s32.totalorder %s3086_s2, %s2572_s13  ;;  %p2577_p0 = scmp.lt.u32.totalorder %s3086_s2, %s3224_s0 }
 0x938   : > { %p2578_p1 = scmp.lt.u32.totalorder %s2576_s12, %s2572_s13  ;;  %p2580_p4 = scmp.lt.u32.totalorder %s2572_s13, %s3086_s2 }
 0x939   : > { %p2574_p12 = pnand %p2573_p11, %p2788_p3 }
 0x93a   : > { %p2579_p2 = por %p2578_p1, %p2577_p0 }
 0x93b   : > { %p2575_p13 = pneg %p2574_p12 }
 0x93c   : > { %p2581_p5 = por %p2580_p4, %p2579_p2 }
 0x93e   : > { %p2582_p6 = pnand %p2581_p5, %p2575_p13 }
 0x940   : > { %2585 = shalt.err (!%p2582_p6)
}
 0x941   : > { %s2662_s28 = smov 128   ;;  %s2663_s19 = smov 8  }
 0x942   : > { %2428 = dma.vmem_to_hbm [thread:$0]  (%p2788_p3), %s3089_s9, 256, %s3086_s2, %s3093_s15, %s2662_s28, %s2662_s28, %s2663_s19  }
 0x943 PF: > { %s3226_s30 = sld [smem:[#allocation14_spill]]  ;;  %s3227_s7 = sld [smem:[#allocation7_spill]] }
 0x949   : > { %p2434_p7 = scmp.ge.s32.totalorder %s3226_s30, 2  ;;  %s1954_s27 = sand.u32 1, %s3227_s7  }
 0x94a   : > { %s1955_s14 = scalar_lea.sflag [#allocation5], %s1954_s27 }
 0x94b   : > { %p2431_p8 = pnand %p2434_p7, %p2798_p9 }
 0x94d   : > { %2619 = dma.done.wait (!%p2431_p8), %s1955_s14, 256  }
 0x94e   : > { %2621 = vsyncadd (!%p2431_p8), %s1955_s14, 4294967040  ;;  %s27_s20 = sadd.s32 1, %s3226_s30   ;;  %s3229_s29 = sld [smem:[#allocation8_spill]] }
 0x94f   : > { %p24_p10 = scmp.ge.s32.totalorder %s27_s20, 6   ;;  %s3230_s30 = sld [smem:[#allocation9_spill]] }
 0x950   : > { %s3231_s15 = sld [smem:[#allocation19_spill]]  ;;  %s3232_s16 = sld [smem:[#allocation12_spill]] }
 0x951   : > { %s3233_s17 = sld [smem:[#allocation13_spill]]  ;;  %s3234_s18 = sld [smem:[#allocation15_spill]] }
 0x952   : > { %s3235_s19 = sld [smem:[#allocation17_spill]]  ;;  %26 = sbr.rel (!%p24_p10) target bundleno = 15 (0xf), region = 166 }
 0x959   :  { %1960 = vsyncpa [#allocation5], 1 }
 0x95a   :  { %1962 = vsyncpa [#allocation5 + $0x1], 1 }

</bundles_post_ra>
